<compile_context>
chip_gen: v7x
topology: tpu7x:2x2x1
jax: 0.10.0
libtpu: 0.0.40
codegen_flags: <defaults>
</compile_context>

<pallas_src>
import jax
import jax.numpy as jnp
from jax.experimental import pallas as pl
from jax.experimental.pallas import tpu as pltpu

INPUT_DIM = 100
HIDDEN = (1024, 512, 256, 1)

LANE = 128        # TPU lane width
PADDED_IN = 128   # first-layer K padded 100 -> 128 (zero pad, mathematically exact)
PADDED_OUT = 128  # last-layer output padded 1 -> 128 (lane-dense stores)

LEAKY_SLOPE = 0.2


def discriminator_kernel(x_ref,
                         w1_ref, b1_ref,
                         w2_ref, b2_ref,
                         w3_ref, b3_ref,
                         w4_ref, b4_ref,
                         o_ref):
    # Layer 1: (tile, 128) @ (128, 1024) — bf16 operands, f32 accumulation on MXU.
    h = jnp.dot(x_ref[...], w1_ref[...], preferred_element_type=jnp.float32)
    # Cast the accumulator once; bias-add + LeakyReLU in bf16 on the VPU.
    h = h.astype(jnp.bfloat16) + b1_ref[...]
    h = jnp.maximum(h, LEAKY_SLOPE * h)          # LeakyReLU(0.2) as mul+max

    h = jnp.dot(h, w2_ref[...], preferred_element_type=jnp.float32)
    h = h.astype(jnp.bfloat16) + b2_ref[...]
    h = jnp.maximum(h, LEAKY_SLOPE * h)

    h = jnp.dot(h, w3_ref[...], preferred_element_type=jnp.float32)
    h = h.astype(jnp.bfloat16) + b3_ref[...]
    h = jnp.maximum(h, LEAKY_SLOPE * h)

    # Final layer: f32 bias add for the real logit column; store bf16 (lane-dense).
    logits = jnp.dot(h, w4_ref[...], preferred_element_type=jnp.float32) + b4_ref[...]
    o_ref[...] = logits.astype(o_ref.dtype)


def _pick_batch_tile(batch):
    """MXU-aligned batch tile.

    Small batches use 32/64-row tiles (bf16 sublane packing is 16) instead of
    padding straight to 128; large batches use up to 1024 rows per step so the
    ~0.35us per-grid-step overhead amortizes, while keeping >= 2 grid steps so
    the 'parallel' axis can shard over v7x's two TensorCores."""
    if batch <= 32:
        return 32
    if batch <= 64:
        return 64
    padded = pl.cdiv(batch, LANE) * LANE
    if padded >= 2048:
        return 1024
    if padded >= 1024:
        return 512
    if padded >= 512:
        return 256
    return 128


def prepare_discriminator_params(params):
    """Hoisted (call-once) padding + bf16 casting of the weights/biases.

    params: list of 4 (w, b) pairs with w shaped (in, out), b shaped (1, out).
    Returns the flat tuple of arrays to pass to discriminator_forward."""
    (w1, b1), (w2, b2), (w3, b3), (w4, b4) = params
    w1p = jnp.pad(w1, ((0, PADDED_IN - w1.shape[0]), (0, 0))).astype(jnp.bfloat16)
    w4p = jnp.pad(w4, ((0, 0), (0, PADDED_OUT - w4.shape[1]))).astype(jnp.bfloat16)
    b4p = jnp.pad(b4, ((0, 0), (0, PADDED_OUT - b4.shape[1])))  # stays f32
    return (w1p, b1.astype(jnp.bfloat16),
            w2.astype(jnp.bfloat16), b2.astype(jnp.bfloat16),
            w3.astype(jnp.bfloat16), b3.astype(jnp.bfloat16),
            w4p, b4p)


@jax.jit
def discriminator_forward(x, w1p, b1, w2, b2, w3, b3, w4p, b4p):
    """x: (B, 100) f32. Weights/biases: output of prepare_discriminator_params."""
    B, F = x.shape
    tile = _pick_batch_tile(B)
    Bp = pl.cdiv(B, tile) * tile

    # Only the activation is padded/cast per call; weights are already prepared.
    xp = jnp.pad(x, ((0, Bp - B), (0, PADDED_IN - F))).astype(jnp.bfloat16)

    grid = (Bp // tile,)

    def weight_spec(arr):
        # Grid-invariant VMEM residents (index_map is constant).
        return pl.BlockSpec(arr.shape, lambda i: (0, 0))

    flops = 2 * Bp * (PADDED_IN * HIDDEN[0]
                      + HIDDEN[0] * HIDDEN[1]
                      + HIDDEN[1] * HIDDEN[2]
                      + HIDDEN[2] * PADDED_OUT)
    bytes_accessed = int(
        xp.size * 2
        + (w1p.size + w2.size + w3.size + w4p.size) * 2
        + (b1.size + b2.size + b3.size) * 2 + b4p.size * 4
        + Bp * PADDED_OUT * 2
    )

    logits = pl.pallas_call(
        discriminator_kernel,
        out_shape=jax.ShapeDtypeStruct((Bp, PADDED_OUT), jnp.bfloat16),
        grid_spec=pltpu.PrefetchScalarGridSpec(
            num_scalar_prefetch=0,
            grid=grid,
            in_specs=[
                pl.BlockSpec((tile, PADDED_IN), lambda i: (i, 0)),
                weight_spec(w1p), weight_spec(b1),
                weight_spec(w2), weight_spec(b2),
                weight_spec(w3), weight_spec(b3),
                weight_spec(w4p), weight_spec(b4p),
            ],
            out_specs=pl.BlockSpec((tile, PADDED_OUT), lambda i: (i, 0)),
        ),
        compiler_params=pltpu.CompilerParams(
            dimension_semantics=("parallel",),
            vmem_limit_bytes=48 * 1024 * 1024,
        ),
        cost_estimate=pl.CostEstimate(
            flops=flops,
            transcendentals=0,
            bytes_accessed=bytes_accessed,
        ),
    )(xp, w1p, b1, w2, b2, w3, b3, w4p, b4p)

    # Column 0 carries the real logit (lanes 1..127 are zero-weight pad, padded
    # batch rows are garbage) — slice first, then exact sigmoid in f32.
    return jax.nn.sigmoid(logits[:B, :1].astype(jnp.float32))


def init_discriminator_params(key, input_dim=INPUT_DIM):
    """Deterministic init mimicking PyTorch nn.Linear default:
    U(-1/sqrt(fan_in), 1/sqrt(fan_in)) for both weight and bias."""
    dims = (input_dim,) + HIDDEN
    params = []
    for i in range(len(HIDDEN)):
        fan_in, fan_out = dims[i], dims[i + 1]
        key, kw, kb = jax.random.split(key, 3)
        bound = 1.0 / jnp.sqrt(jnp.float32(fan_in))
        # stored as (in, out) == W.T relative to PyTorch's (out, in)
        w = jax.random.uniform(kw, (fan_in, fan_out), jnp.float32, -bound, bound)
        b = jax.random.uniform(kb, (1, fan_out), jnp.float32, -bound, bound)
        params.append((w, b))
    return params


def reference_forward(x, params):
    """Exact f32 PyTorch-semantics forward."""
    h = x
    for i, (w, b) in enumerate(params):
        h = h @ w + b
        if i < len(params) - 1:
            h = jnp.where(h > 0, h, LEAKY_SLOPE * h)
    return 1.0 / (1.0 + jnp.exp(-h))


def reference_forward_matched(x, params):
    """Reference matching the kernel's precision path (bf16 matmul / f32 acc /
    bf16 elementwise / bf16 logit store / exact sigmoid outside)."""
    (w1, b1), (w2, b2), (w3, b3), (w4, b4) = params
    h = x.astype(jnp.bfloat16)
    for (w, b) in ((w1, b1), (w2, b2), (w3, b3)):
        acc = jnp.dot(h, w.astype(jnp.bfloat16), preferred_element_type=jnp.float32)
        h = acc.astype(jnp.bfloat16) + b.astype(jnp.bfloat16)
        h = jnp.maximum(h, LEAKY_SLOPE * h)
    z = jnp.dot(h, w4.astype(jnp.bfloat16), preferred_element_type=jnp.float32) + b4
    z = z.astype(jnp.bfloat16).astype(jnp.float32)
    return jax.nn.sigmoid(z)


if __name__ == "__main__":
    key = jax.random.PRNGKey(0)
    kp, kx = jax.random.split(key)

    params = init_discriminator_params(kp, INPUT_DIM)
    prepared = prepare_discriminator_params(params)   # pad/cast once, reuse per call

    batch = 2
    x = jax.random.normal(kx, (batch, INPUT_DIM), dtype=jnp.float32)

    out = discriminator_forward(x, *prepared)
    out = jax.block_until_ready(out)
    assert out.shape == (batch, 1), out.shape

    # Tight check against a reference with matching (bf16) precision path.
    ref_matched = reference_forward_matched(x, params)
    assert jnp.allclose(out, ref_matched, atol=3e-3, rtol=3e-3), (out, ref_matched)

    # Looser check against the exact f32 PyTorch-semantics forward.
    ref_f32 = reference_forward(x, params)
    assert jnp.allclose(out, ref_f32, atol=3e-2, rtol=3e-2), (out, ref_f32)

    print("KERNEL_OK")
</pallas_src>

<mosaic_0001>
module attributes {stable_mosaic.version = 11 : i64} {
  func.func @discriminator_kernel(%arg0: i32, %arg1: memref<32x128xbf16, #tpu.memory_space<vmem>>, %arg2: memref<128x1024xbf16, #tpu.memory_space<vmem>>, %arg3: memref<1x1024xbf16, #tpu.memory_space<vmem>>, %arg4: memref<1024x512xbf16, #tpu.memory_space<vmem>>, %arg5: memref<1x512xbf16, #tpu.memory_space<vmem>>, %arg6: memref<512x256xbf16, #tpu.memory_space<vmem>>, %arg7: memref<1x256xbf16, #tpu.memory_space<vmem>>, %arg8: memref<256x128xbf16, #tpu.memory_space<vmem>>, %arg9: memref<1x128xf32, #tpu.memory_space<vmem>>, %arg10: memref<32x128xbf16, #tpu.memory_space<vmem>>) attributes {dimension_semantics = [#tpu.dimension_semantics<parallel>], iteration_bounds = array<i64: 1>, scalar_prefetch = 0 : i64, scratch_operands = 0 : i64, tpu.core_type = #tpu.core_type<tc>, window_params = [{transform_indices = @transform_0, window_bounds = array<i64: 32, 128>}, {pipeline_mode = #tpu.pipeline_mode<synchronous>, transform_indices = @transform_1, window_bounds = array<i64: 128, 1024>}, {pipeline_mode = #tpu.pipeline_mode<synchronous>, transform_indices = @transform_2, window_bounds = array<i64: 1, 1024>}, {pipeline_mode = #tpu.pipeline_mode<synchronous>, transform_indices = @transform_3, window_bounds = array<i64: 1024, 512>}, {pipeline_mode = #tpu.pipeline_mode<synchronous>, transform_indices = @transform_4, window_bounds = array<i64: 1, 512>}, {pipeline_mode = #tpu.pipeline_mode<synchronous>, transform_indices = @transform_5, window_bounds = array<i64: 512, 256>}, {pipeline_mode = #tpu.pipeline_mode<synchronous>, transform_indices = @transform_6, window_bounds = array<i64: 1, 256>}, {pipeline_mode = #tpu.pipeline_mode<synchronous>, transform_indices = @transform_7, window_bounds = array<i64: 256, 128>}, {pipeline_mode = #tpu.pipeline_mode<synchronous>, transform_indices = @transform_8, window_bounds = array<i64: 1, 128>}, {transform_indices = @transform_9, window_bounds = array<i64: 32, 128>}]} {
    %c0 = arith.constant 0 : index
    %c0_0 = arith.constant 0 : index
    %0 = vector.load %arg1[%c0, %c0_0] : memref<32x128xbf16, #tpu.memory_space<vmem>>, vector<32x128xbf16>
    %c0_1 = arith.constant 0 : index
    %c0_2 = arith.constant 0 : index
    %1 = vector.load %arg2[%c0_1, %c0_2] : memref<128x1024xbf16, #tpu.memory_space<vmem>>, vector<128x1024xbf16>
    %cst = arith.constant dense<0.000000e+00> : vector<32x1024xf32>
    %2 = tpu.matmul %0, %1, %cst {dimension_numbers = #tpu.dot_dimension_numbers<[1], [0], [0], [1], [0, 0, 1, 1], [], []>} : vector<32x128xbf16>, vector<128x1024xbf16>, vector<32x1024xf32> -> vector<32x1024xf32>
    %3 = arith.truncf %2 : vector<32x1024xf32> to vector<32x1024xbf16>
    %c0_3 = arith.constant 0 : index
    %c0_4 = arith.constant 0 : index
    %4 = vector.load %arg3[%c0_3, %c0_4] : memref<1x1024xbf16, #tpu.memory_space<vmem>>, vector<1x1024xbf16>
    %5 = vector.broadcast %4 : vector<1x1024xbf16> to vector<32x1024xbf16>
    %6 = arith.addf %3, %5 : vector<32x1024xbf16>
    %cst_5 = arith.constant 2.001950e-01 : bf16
    %7 = vector.broadcast %cst_5 : bf16 to vector<32x1024xbf16>
    %8 = arith.mulf %7, %6 : vector<32x1024xbf16>
    %9 = arith.maximumf %6, %8 : vector<32x1024xbf16>
    %c0_6 = arith.constant 0 : index
    %c0_7 = arith.constant 0 : index
    %10 = vector.load %arg4[%c0_6, %c0_7] : memref<1024x512xbf16, #tpu.memory_space<vmem>>, vector<1024x512xbf16>
    %cst_8 = arith.constant dense<0.000000e+00> : vector<32x512xf32>
    %11 = tpu.matmul %9, %10, %cst_8 {dimension_numbers = #tpu.dot_dimension_numbers<[1], [0], [0], [1], [0, 0, 1, 1], [], []>} : vector<32x1024xbf16>, vector<1024x512xbf16>, vector<32x512xf32> -> vector<32x512xf32>
    %12 = arith.truncf %11 : vector<32x512xf32> to vector<32x512xbf16>
    %c0_9 = arith.constant 0 : index
    %c0_10 = arith.constant 0 : index
    %13 = vector.load %arg5[%c0_9, %c0_10] : memref<1x512xbf16, #tpu.memory_space<vmem>>, vector<1x512xbf16>
    %14 = vector.broadcast %13 : vector<1x512xbf16> to vector<32x512xbf16>
    %15 = arith.addf %12, %14 : vector<32x512xbf16>
    %cst_11 = arith.constant 2.001950e-01 : bf16
    %16 = vector.broadcast %cst_11 : bf16 to vector<32x512xbf16>
    %17 = arith.mulf %16, %15 : vector<32x512xbf16>
    %18 = arith.maximumf %15, %17 : vector<32x512xbf16>
    %c0_12 = arith.constant 0 : index
    %c0_13 = arith.constant 0 : index
    %19 = vector.load %arg6[%c0_12, %c0_13] : memref<512x256xbf16, #tpu.memory_space<vmem>>, vector<512x256xbf16>
    %cst_14 = arith.constant dense<0.000000e+00> : vector<32x256xf32>
    %20 = tpu.matmul %18, %19, %cst_14 {dimension_numbers = #tpu.dot_dimension_numbers<[1], [0], [0], [1], [0, 0, 1, 1], [], []>} : vector<32x512xbf16>, vector<512x256xbf16>, vector<32x256xf32> -> vector<32x256xf32>
    %21 = arith.truncf %20 : vector<32x256xf32> to vector<32x256xbf16>
    %c0_15 = arith.constant 0 : index
    %c0_16 = arith.constant 0 : index
    %22 = vector.load %arg7[%c0_15, %c0_16] : memref<1x256xbf16, #tpu.memory_space<vmem>>, vector<1x256xbf16>
    %23 = vector.broadcast %22 : vector<1x256xbf16> to vector<32x256xbf16>
    %24 = arith.addf %21, %23 : vector<32x256xbf16>
    %cst_17 = arith.constant 2.001950e-01 : bf16
    %25 = vector.broadcast %cst_17 : bf16 to vector<32x256xbf16>
    %26 = arith.mulf %25, %24 : vector<32x256xbf16>
    %27 = arith.maximumf %24, %26 : vector<32x256xbf16>
    %c0_18 = arith.constant 0 : index
    %c0_19 = arith.constant 0 : index
    %28 = vector.load %arg8[%c0_18, %c0_19] : memref<256x128xbf16, #tpu.memory_space<vmem>>, vector<256x128xbf16>
    %cst_20 = arith.constant dense<0.000000e+00> : vector<32x128xf32>
    %29 = tpu.matmul %27, %28, %cst_20 {dimension_numbers = #tpu.dot_dimension_numbers<[1], [0], [0], [1], [0, 0, 1, 1], [], []>} : vector<32x256xbf16>, vector<256x128xbf16>, vector<32x128xf32> -> vector<32x128xf32>
    %c0_21 = arith.constant 0 : index
    %c0_22 = arith.constant 0 : index
    %30 = vector.load %arg9[%c0_21, %c0_22] : memref<1x128xf32, #tpu.memory_space<vmem>>, vector<1x128xf32>
    %31 = vector.broadcast %30 : vector<1x128xf32> to vector<32x128xf32>
    %32 = arith.addf %29, %31 : vector<32x128xf32>
    %33 = arith.truncf %32 : vector<32x128xf32> to vector<32x128xbf16>
    %c0_23 = arith.constant 0 : index
    %c0_24 = arith.constant 0 : index
    %34 = vector.load %arg10[%c0_23, %c0_24] : memref<32x128xbf16, #tpu.memory_space<vmem>>, vector<32x128xbf16>
    tpu.vector_store %arg10[%c0_23, %c0_24], %33 {strides = array<i32>} : memref<32x128xbf16, #tpu.memory_space<vmem>>, vector<32x128xbf16>,
    return
  }
  func.func @transform_0(%arg0: i32) -> (i32, i32) {
    %c0_i32 = arith.constant 0 : i32
    %c0_i32_0 = arith.constant 0 : i32
    return %arg0, %c0_i32 : i32, i32
  }
  func.func @transform_1(%arg0: i32) -> (i32, i32) {
    %c0_i32 = arith.constant 0 : i32
    %c0_i32_0 = arith.constant 0 : i32
    %c0_i32_1 = arith.constant 0 : i32
    return %c0_i32, %c0_i32_0 : i32, i32
  }
  func.func @transform_2(%arg0: i32) -> (i32, i32) {
    %c0_i32 = arith.constant 0 : i32
    %c0_i32_0 = arith.constant 0 : i32
    %c0_i32_1 = arith.constant 0 : i32
    return %c0_i32, %c0_i32_0 : i32, i32
  }
  func.func @transform_3(%arg0: i32) -> (i32, i32) {
    %c0_i32 = arith.constant 0 : i32
    %c0_i32_0 = arith.constant 0 : i32
    %c0_i32_1 = arith.constant 0 : i32
    return %c0_i32, %c0_i32_0 : i32, i32
  }
  func.func @transform_4(%arg0: i32) -> (i32, i32) {
    %c0_i32 = arith.constant 0 : i32
    %c0_i32_0 = arith.constant 0 : i32
    %c0_i32_1 = arith.constant 0 : i32
    return %c0_i32, %c0_i32_0 : i32, i32
  }
  func.func @transform_5(%arg0: i32) -> (i32, i32) {
    %c0_i32 = arith.constant 0 : i32
    %c0_i32_0 = arith.constant 0 : i32
    %c0_i32_1 = arith.constant 0 : i32
    return %c0_i32, %c0_i32_0 : i32, i32
  }
  func.func @transform_6(%arg0: i32) -> (i32, i32) {
    %c0_i32 = arith.constant 0 : i32
    %c0_i32_0 = arith.constant 0 : i32
    %c0_i32_1 = arith.constant 0 : i32
    return %c0_i32, %c0_i32_0 : i32, i32
  }
  func.func @transform_7(%arg0: i32) -> (i32, i32) {
    %c0_i32 = arith.constant 0 : i32
    %c0_i32_0 = arith.constant 0 : i32
    %c0_i32_1 = arith.constant 0 : i32
    return %c0_i32, %c0_i32_0 : i32, i32
  }
  func.func @transform_8(%arg0: i32) -> (i32, i32) {
    %c0_i32 = arith.constant 0 : i32
    %c0_i32_0 = arith.constant 0 : i32
    %c0_i32_1 = arith.constant 0 : i32
    return %c0_i32, %c0_i32_0 : i32, i32
  }
  func.func @transform_9(%arg0: i32) -> (i32, i32) {
    %c0_i32 = arith.constant 0 : i32
    %c0_i32_0 = arith.constant 0 : i32
    return %arg0, %c0_i32 : i32, i32
  }
}

</mosaic_0001>

<bundles_post_ra>
// kernel: discriminator_forward.1
= control target key start
LH: loop header
LB: loop body
LE: loop exit
PB: predicated region body
PF: predicated region fallthrough
CT: control target
= control target key end

     0   :  { %14 = vsyncpa [#allocation3], 0  ;;  %s5154_s0 = inlined_call_operand.vmem [shape: bf16[32,128], index: 0, kind: input, shape index: {}]   ;;  %s5155_s1 = inlined_call_operand.hbm [shape: bf16[128,1024], index: 1, kind: input, shape index: {}]   ;;  %s5156_s2 = inlined_call_operand.vmem [shape: bf16[1,1024], index: 2, kind: input, shape index: {}]   ;;  %s5157_s3 = inlined_call_operand.hbm [shape: bf16[1024,512], index: 3, kind: input, shape index: {}]   ;;  %s5158_s4 = inlined_call_operand.vmem [shape: bf16[1,512], index: 4, kind: input, shape index: {}]   ;;  %s5159_s5 = inlined_call_operand.hbm [shape: bf16[512,256], index: 5, kind: input, shape index: {}]   ;;  %s5160_s6 = inlined_call_operand.vmem [shape: bf16[1,256], index: 6, kind: input, shape index: {}]   ;;  %s5161_s7 = inlined_call_operand.hbm [shape: bf16[256,128], index: 7, kind: input, shape index: {}]   ;;  %s5162_s8 = inlined_call_operand.vmem [shape: f32[1,128], index: 8, kind: input, shape index: {}]   ;;  %s5163_s9 = inlined_call_operand.vmem [shape: bf16[32,128], index: 9, kind: output, shape index: {}]  }
   0x1   :  { %15 = vsyncpa [#allocation5], 0 }
   0x2   :  { %16 = vsyncpa [#allocation8], 0  ;;  %s4788_s30 = smov [#allocation4]   ;;  %s4694_s13 = scalar_lea.hbm %s5157_s3, 32768 }
   0x3   :  { %s38_s10 = sshll.u32 %s4788_s30, 4  ;;  %p4695_p0 = scmp.ne.s32.totalorder %s5157_s3, %s4694_s13  ;;  %s39_s10 = int_to_ptr.vmem [resolvable:$true] %s38_s10 }
   0x4   :  { %p4698_p1 = scmp.lt.u32.totalorder %s4694_s13, %s5157_s3 }
   0x6   :  { %p4700_p2 = pnand %p4698_p1, %p4695_p0 }
   0x8   :  { %4703 = shalt.err (!%p4700_p2)
}
   0x9   :  { %s4704_s18 = scalar_lea.vmem %s39_s10, 32768  ;;  %p4709_p4 = scmp.lt.s32.totalorder %s39_s10, %s39_s10 }
   0xa   :  { %p4705_p3 = scmp.ne.s32.totalorder %s39_s10, %s4704_s18  ;;  %p4710_p5 = scmp.lt.s32.totalorder %s4704_s18, %s4704_s18 }
   0xc   :  { %p4711_p6 = por %p4710_p5, %p4709_p4 }
   0xe   :  { %p4712_p7 = pnand %p4711_p6, %p4705_p3 }
  0x10   :  { %4715 = shalt.err (!%p4712_p7)
}
  0x11   :  { %s4789_s19 = smov 256   ;;  %s4790_s20 = smov 16  }
  0x12   :  { %44 = dma.hbm_to_vmem [thread:$0]  %s5157_s3, 32768, %s39_s10, [#allocation5], %s4789_s19, %s4789_s19, %s4790_s20  }
  0x13   :  { %s4791_s23 = smov [#allocation2]   ;;  %s4716_s27 = scalar_lea.hbm %s5155_s1, 8192 }
  0x14   :  { %s24_s24 = sshll.u32 %s4791_s23, 4  ;;  %p4717_p8 = scmp.ne.s32.totalorder %s5155_s1, %s4716_s27  ;;  %s25_s24 = int_to_ptr.vmem [resolvable:$true] %s24_s24 }
  0x15   :  { %p4720_p9 = scmp.lt.u32.totalorder %s4716_s27, %s5155_s1 }
  0x17   :  { %p4722_p10 = pnand %p4720_p9, %p4717_p8 }
  0x19   :  { %4725 = shalt.err (!%p4722_p10)
}
  0x1a   :  { %s4726_s12 = scalar_lea.vmem %s25_s24, 8192  ;;  %p4731_p12 = scmp.lt.s32.totalorder %s25_s24, %s25_s24 }
  0x1b   :  { %p4727_p11 = scmp.ne.s32.totalorder %s25_s24, %s4726_s12  ;;  %p4732_p13 = scmp.lt.s32.totalorder %s4726_s12, %s4726_s12 }
  0x1d   :  { %p4733_p0 = por %p4732_p13, %p4731_p12 }
  0x1f   :  { %p4734_p1 = pnand %p4733_p0, %p4727_p11 }
  0x21   :  { %4737 = shalt.err (!%p4734_p1)
}
  0x22   :  { %s4792_s3 = smov 512   ;;  %s4793_s10 = smov 32  }
  0x23   :  { %30 = dma.hbm_to_vmem [thread:$0]  %s5155_s1, 8192, %s25_s24, [#allocation3], %s4792_s3, %s4792_s3, %s4793_s10  }
  0x24   :  { %s4794_s15 = smov [#allocation6]   ;;  %s4738_s19 = scalar_lea.hbm %s5159_s5, 8192 }
  0x25   :  { %s52_s16 = sshll.u32 %s4794_s15, 4  ;;  %p4739_p2 = scmp.ne.s32.totalorder %s5159_s5, %s4738_s19  ;;  %s53_s16 = int_to_ptr.vmem [resolvable:$true] %s52_s16 }
  0x26   :  { %p4742_p3 = scmp.lt.u32.totalorder %s4738_s19, %s5159_s5 }
  0x28   :  { %p4744_p4 = pnand %p4742_p3, %p4739_p2 }
  0x2a   :  { %4747 = shalt.err (!%p4744_p4)
}
  0x2b   :  { %s4748_s25 = scalar_lea.vmem %s53_s16, 8192  ;;  %p4753_p6 = scmp.lt.s32.totalorder %s53_s16, %s53_s16 }
  0x2c   :  { %p4749_p5 = scmp.ne.s32.totalorder %s53_s16, %s4748_s25  ;;  %p4754_p7 = scmp.lt.s32.totalorder %s4748_s25, %s4748_s25 }
  0x2e   :  { %p4755_p8 = por %p4754_p7, %p4753_p6 }
  0x30   :  { %p4756_p9 = pnand %p4755_p8, %p4749_p5 }
  0x32   :  { %4759 = shalt.err (!%p4756_p9)
}
  0x33   :  { %s4795_s1 = smov 128   ;;  %s4796_s24 = smov 8  }
  0x34   :  { %58 = dma.hbm_to_vmem [thread:$0]  %s5159_s5, 8192, %s53_s16, [#allocation5], %s4795_s1, %s4795_s1, %s4796_s24  }
  0x35   :  { %s4797_s28 = smov [#allocation7]   ;;  %s4760_s12 = scalar_lea.hbm %s5161_s7, 2048 }
  0x36   :  { %s66_s29 = sshll.u32 %s4797_s28, 4  ;;  %p4761_p10 = scmp.ne.s32.totalorder %s5161_s7, %s4760_s12  ;;  %s67_s29 = int_to_ptr.vmem [resolvable:$true] %s66_s29 }
  0x37   :  { %p4764_p11 = scmp.lt.u32.totalorder %s4760_s12, %s5161_s7 }
  0x39   :  { %p4766_p12 = pnand %p4764_p11, %p4761_p10 }
  0x3b   :  { %4769 = shalt.err (!%p4766_p12)
}
  0x3c   :  { %s4770_s15 = scalar_lea.vmem %s67_s29, 2048  ;;  %p4775_p0 = scmp.lt.s32.totalorder %s67_s29, %s67_s29 }
  0x3d   :  { %p4771_p13 = scmp.ne.s32.totalorder %s67_s29, %s4770_s15  ;;  %p4776_p1 = scmp.lt.s32.totalorder %s4770_s15, %s4770_s15 }
  0x3f   :  { %p4777_p2 = por %p4776_p1, %p4775_p0 }
  0x41   :  { %p4778_p3 = pnand %p4777_p2, %p4771_p13 }
  0x43   :  { %4781 = shalt.err (!%p4778_p3)
}
  0x44   :  { %s4798_s5 = smov 64   ;;  %s4799_s16 = smov 4  }
  0x45   :  { %72 = dma.hbm_to_vmem [thread:$0]  %s5161_s7, 2048, %s67_s29, [#allocation8], %s4798_s5, %s4798_s5, %s4799_s16  }
  0x46   :  { %4782 = dma.done.wait [#allocation3], 8192  }
  0x47   :  { %4783 = vsyncadd [#allocation3], 4294959104 }
  0x48   :  { %4784 = dma.done.wait [#allocation5], 40960  }
  0x49   :  { %4785 = vsyncadd [#allocation5], 4294926336 }
  0x4a   :  { %4786 = dma.done.wait [#allocation8], 2048  }
  0x4b   :  { %4787 = vsyncadd [#allocation8], 4294965248  ;;  %v4800_v0 = vmov 0   ;;  %v93_v1 = vld [vmem:[#allocation2] sm:$0xff]  ;;  %v95_v19 = vld [vmem:[#allocation2 + $0x10] sm:$0xff] }
  0x4c   :  { %521 = vmatprep.mubr.bf16.mxu1 %v4800_v0  ;;  %627 = vmatprep.mubr.bf16.mxu0 %v4800_v0  ;;  %v97_v2 = vld [vmem:[#allocation2 + $0x20] sm:$0xff]  ;;  %v99_v21 = vld [vmem:[#allocation2 + $0x30] sm:$0xff]  ;;  %v94_v49 = vld [vmem:[#allocation2 + $0x8] sm:$0xff] }
  0x4d   :  { %v101_v3 = vld [vmem:[#allocation2 + $0x40] sm:$0xff]  ;;  %v3676_v4 = vcombine.high %v93_v1, %v97_v2  ;;  %v3675_v5 = vcombine.low %v93_v1, %v97_v2  ;;  %v103_v22 = vld [vmem:[#allocation2 + $0x50] sm:$0xff]  ;;  %v3680_v26 = vcombine.high %v95_v19, %v99_v21  ;;  %v3679_v27 = vcombine.low %v95_v19, %v99_v21  ;;  %v98_v50 = vld [vmem:[#allocation2 + $0x28] sm:$0xff] }
  0x4e   :  { %v105_v6 = vld [vmem:[#allocation2 + $0x60] sm:$0xff]  ;;  %v107_v23 = vld [vmem:[#allocation2 + $0x70] sm:$0xff]  ;;  %v3678_v57 = vcombine.high %v94_v49, %v98_v50  ;;  %v102_v58 = vld [vmem:[#allocation2 + $0x48] sm:$0xff]  ;;  %v3677_v1 = vcombine.low %v94_v49, %v98_v50 }
  0x4f   :  { %v3684_v7 = vcombine.high %v101_v3, %v105_v6  ;;  %v109_v8 = vld [vmem:[#allocation2 + $0x80] sm:$0xff]  ;;  %489 = vmatprep.subr.bf16.mxu1 %v3676_v4  ;;  %v3683_v10 = vcombine.low %v101_v3, %v105_v6  ;;  %v3688_v28 = vcombine.high %v103_v22, %v107_v23  ;;  %v111_v29 = vld [vmem:[#allocation2 + $0x90] sm:$0xff]  ;;  %595 = vmatprep.subr.bf16.mxu0 %v3680_v26  ;;  %v106_v59 = vld [vmem:[#allocation2 + $0x68] sm:$0xff] }
  0x50   :  { %v113_v9 = vld [vmem:[#allocation2 + $0xa0] sm:$0xff]  ;;  %490 = vmatpush1.bf16.msra.mxu1 %v3675_v5  ;;  %v115_v30 = vld [vmem:[#allocation2 + $0xb0] sm:$0xff]  ;;  %596 = vmatpush1.bf16.msra.mxu0 %v3679_v27  ;;  %v3687_v33 = vcombine.low %v103_v22, %v107_v23  ;;  %v3686_v2 = vcombine.high %v102_v58, %v106_v59  ;;  %v110_v3 = vld [vmem:[#allocation2 + $0x88] sm:$0xff] }
  0x51   :  { %491 = vmatprep.subr.bf16.mxu1 %v3684_v7  ;;  %v3692_v11 = vcombine.high %v109_v8, %v113_v9  ;;  %v117_v12 = vld [vmem:[#allocation2 + $0xc0] sm:$0xff]  ;;  %v3691_v14 = vcombine.low %v109_v8, %v113_v9  ;;  %597 = vmatprep.subr.bf16.mxu0 %v3688_v28  ;;  %v3696_v36 = vcombine.high %v111_v29, %v115_v30  ;;  %v119_v37 = vld [vmem:[#allocation2 + $0xd0] sm:$0xff]  ;;  %v114_v4 = vld [vmem:[#allocation2 + $0xa8] sm:$0xff] }
  0x52   :  { %v121_v13 = vld [vmem:[#allocation2 + $0xe0] sm:$0xff]  ;;  %v123_v38 = vld [vmem:[#allocation2 + $0xf0] sm:$0xff]  ;;  %v3695_v41 = vcombine.low %v111_v29, %v115_v30  ;;  %v3685_v9 = vcombine.low %v102_v58, %v106_v59  ;;  %v130_v19 = vld [vmem:[#allocation2 + $0x128] sm:$0xff] }
  0x53   :  { %v3700_v15 = vcombine.high %v117_v12, %v121_v13  ;;  %v125_v16 = vld [vmem:[#allocation2 + $0x100] sm:$0xff]  ;;  %v3699_v18 = vcombine.low %v117_v12, %v121_v13  ;;  %v3704_v44 = vcombine.high %v119_v37, %v123_v38  ;;  %v127_v45 = vld [vmem:[#allocation2 + $0x110] sm:$0xff]  ;;  %v3703_v51 = vcombine.low %v119_v37, %v123_v38  ;;  %v122_v13 = vld [vmem:[#allocation2 + $0xe8] sm:$0xff] }
  0x54   :  { %492 = vmatpush1.bf16.msra.mxu1 %v3683_v10  ;;  %v129_v17 = vld [vmem:[#allocation2 + $0x120] sm:$0xff]  ;;  %598 = vmatpush1.bf16.msra.mxu0 %v3687_v33  ;;  %v131_v46 = vld [vmem:[#allocation2 + $0x130] sm:$0xff]  ;;  %v3694_v10 = vcombine.high %v110_v3, %v114_v4  ;;  %v134_v23 = vld [vmem:[#allocation2 + $0x148] sm:$0xff] }
  0x55   :  { %493 = vmatprep.subr.bf16.mxu1 %v3692_v11  ;;  %v3708_v20 = vcombine.high %v125_v16, %v129_v17  ;;  %v133_v24 = vld [vmem:[#allocation2 + $0x140] sm:$0xff]  ;;  %v3707_v31 = vcombine.low %v125_v16, %v129_v17  ;;  %599 = vmatprep.subr.bf16.mxu0 %v3696_v36  ;;  %v3712_v52 = vcombine.high %v127_v45, %v131_v46  ;;  %v135_v53 = vld [vmem:[#allocation2 + $0x150] sm:$0xff]  ;;  %v118_v11 = vld [vmem:[#allocation2 + $0xc8] sm:$0xff] }
  0x56   :  { %v137_v25 = vld [vmem:[#allocation2 + $0x160] sm:$0xff]  ;;  %v139_v54 = vld [vmem:[#allocation2 + $0x170] sm:$0xff]  ;;  %v3711_v60 = vcombine.low %v127_v45, %v131_v46  ;;  %v3693_v16 = vcombine.low %v110_v3, %v114_v4  ;;  %v3702_v17 = vcombine.high %v118_v11, %v122_v13  ;;  %v3701_v22 = vcombine.low %v118_v11, %v122_v13  ;;  %v142_v29 = vld [vmem:[#allocation2 + $0x188] sm:$0xff] }
  0x57   :  { %v3716_v32 = vcombine.high %v133_v24, %v137_v25  ;;  %v141_v34 = vld [vmem:[#allocation2 + $0x180] sm:$0xff]  ;;  %v3715_v39 = vcombine.low %v133_v24, %v137_v25  ;;  %v3720_v61 = vcombine.high %v135_v53, %v139_v54  ;;  %v143_v62 = vld [vmem:[#allocation2 + $0x190] sm:$0xff]  ;;  %v3719_v5 = vcombine.low %v135_v53, %v139_v54  ;;  %v138_v25 = vld [vmem:[#allocation2 + $0x168] sm:$0xff] }
  0x58   :  { %494 = vmatpush1.bf16.msra.mxu1 %v3691_v14  ;;  %v145_v35 = vld [vmem:[#allocation2 + $0x1a0] sm:$0xff]  ;;  %600 = vmatpush1.bf16.msra.mxu0 %v3695_v41  ;;  %v147_v63 = vld [vmem:[#allocation2 + $0x1b0] sm:$0xff]  ;;  %v3718_v30 = vcombine.high %v134_v23, %v138_v25  ;;  %v154_v37 = vld [vmem:[#allocation2 + $0x1e8] sm:$0xff] }
  0x59   :  { %495 = vmatprep.subr.bf16.mxu1 %v3700_v15  ;;  %v3724_v40 = vcombine.high %v141_v34, %v145_v35  ;;  %v149_v42 = vld [vmem:[#allocation2 + $0x1c0] sm:$0xff]  ;;  %v3723_v47 = vcombine.low %v141_v34, %v145_v35  ;;  %601 = vmatprep.subr.bf16.mxu0 %v3704_v44  ;;  %v3728_v6 = vcombine.high %v143_v62, %v147_v63  ;;  %v151_v7 = vld [vmem:[#allocation2 + $0x1d0] sm:$0xff]  ;;  %v4912_v15 = vld [vmem:[%s5154_s0 + $0x8] sm:$0xff]  }
  0x5a   :  { %v153_v43 = vld [vmem:[#allocation2 + $0x1e0] sm:$0xff]  ;;  %v155_v8 = vld [vmem:[#allocation2 + $0x1f0] sm:$0xff]  ;;  %v3727_v12 = vcombine.low %v143_v62, %v147_v63  ;;  %v3717_v34 = vcombine.low %v134_v23, %v138_v25  ;;  %v150_v35 = vld [vmem:[#allocation2 + $0x1c8] sm:$0xff] }
  0x5b   :  { %v3732_v48 = vcombine.high %v149_v42, %v153_v43  ;;  %v3731_v55 = vcombine.low %v149_v42, %v153_v43  ;;  %v4905_v56 = vld [vmem:[%s5154_s0] sm:$0xff]   ;;  %v3736_v14 = vcombine.high %v151_v7, %v155_v8  ;;  %v96_v41 = vld [vmem:[#allocation2 + $0x18] sm:$0xff]  ;;  %v3734_v43 = vcombine.high %v150_v35, %v154_v37 }
  0x5c   :  { %496 = vmatpush1.bf16.msra.mxu1 %v3699_v18  ;;  %602 = vmatpush1.bf16.msra.mxu0 %v3703_v51  ;;  %v126_v18 = vld [vmem:[#allocation2 + $0x108] sm:$0xff]  ;;  %v4199_v21 = vld [vmem:[#allocation4 + $0x4] ss:$16 sps:$4 sm:$0xff]   ;;  %v4197_v26 = vld [vmem:[#allocation4] ss:$16 sps:$4 sm:$0xff]  }
  0x5d   :  { %497 = vmatprep.subr.bf16.mxu1 %v3708_v20  ;;  %603 = vmatprep.subr.bf16.mxu0 %v3712_v52  ;;  %v3735_v20 = vcombine.low %v151_v7, %v155_v8  ;;  %v3710_v24 = vcombine.high %v126_v18, %v130_v19  ;;  %v4205_v27 = vld [vmem:[#allocation4 + $0x24] ss:$16 sps:$4 sm:$0xff]   ;;  %v3709_v28 = vcombine.low %v126_v18, %v130_v19  ;;  %v4209_v38 = vld [vmem:[#allocation4 + $0x40] ss:$16 sps:$4 sm:$0xff]   ;;  %v100_v42 = vld [vmem:[#allocation2 + $0x38] sm:$0xff] }
  0x5e   :  { %v4211_v33 = vld [vmem:[#allocation4 + $0x44] ss:$16 sps:$4 sm:$0xff]   ;;  %v4215_v44 = vld [vmem:[#allocation4 + $0x60] ss:$16 sps:$4 sm:$0xff]   ;;  %v108_v49 = vld [vmem:[#allocation2 + $0x78] sm:$0xff]  ;;  %v3682_v51 = vcombine.high %v96_v41, %v100_v42  ;;  %v3681_v53 = vcombine.low %v96_v41, %v100_v42 }
  0x5f   :  { %v4223_v45 = vld [vmem:[#allocation4 + $0x84] ss:$16 sps:$4 sm:$0xff]   ;;  %v4221_v46 = vld [vmem:[#allocation4 + $0x80] ss:$16 sps:$4 sm:$0xff]   ;;  %v112_v54 = vld [vmem:[#allocation2 + $0x98] sm:$0xff] }
  0x60   :  { %498 = vmatpush1.bf16.msra.mxu1 %v3707_v31  ;;  %604 = vmatpush1.bf16.msra.mxu0 %v3711_v60  ;;  %v146_v31 = vld [vmem:[#allocation2 + $0x1a8] sm:$0xff]  ;;  %v4229_v50 = vld [vmem:[#allocation4 + $0xa4] ss:$16 sps:$4 sm:$0xff]   ;;  %v4227_v52 = vld [vmem:[#allocation4 + $0xa0] ss:$16 sps:$4 sm:$0xff]  }
  0x61   :  { %499 = vmatprep.subr.bf16.mxu1 %v3716_v32  ;;  %605 = vmatprep.subr.bf16.mxu0 %v3720_v61  ;;  %v4203_v32 = vld [vmem:[#allocation4 + $0x20] ss:$16 sps:$4 sm:$0xff]   ;;  %v3726_v36 = vcombine.high %v142_v29, %v146_v31  ;;  %v120_v61 = vld [vmem:[#allocation2 + $0xd8] sm:$0xff]  ;;  %v4241_v63 = vld [vmem:[#allocation4 + $0xe4] ss:$16 sps:$4 sm:$0xff]  }
  0x62   :  { %v4233_v59 = vld [vmem:[#allocation4 + $0xc0] ss:$16 sps:$4 sm:$0xff]   ;;  %v124_v62 = vld [vmem:[#allocation2 + $0xf8] sm:$0xff]  ;;  %v4259_v19 = vld [vmem:[#allocation4 + $0x144] ss:$16 sps:$4 sm:$0xff]  }
  0x63   :  { %v128_v4 = vld [vmem:[#allocation2 + $0x118] sm:$0xff]  ;;  %v3706_v7 = vcombine.high %v120_v61, %v124_v62  ;;  %v4245_v8 = vld [vmem:[#allocation4 + $0x100] ss:$16 sps:$4 sm:$0xff]   ;;  %v4265_v25 = vld [vmem:[#allocation4 + $0x164] ss:$16 sps:$4 sm:$0xff]  }
  0x64   :  { %500 = vmatpush1.bf16.msra.mxu1 %v3715_v39  ;;  %606 = vmatpush1.bf16.msra.mxu0 %v3719_v5  ;;  %v4217_v39 = vld [vmem:[#allocation4 + $0x64] ss:$16 sps:$4 sm:$0xff]   ;;  %v132_v5 = vld [vmem:[#allocation2 + $0x138] sm:$0xff] }
  0x65   :  { %501 = vmatprep.subr.bf16.mxu1 %v3724_v40  ;;  %607 = vmatprep.subr.bf16.mxu0 %v3728_v6  ;;  %v3725_v40 = vcombine.low %v142_v29, %v146_v31  ;;  %v4247_v6 = vld [vmem:[#allocation4 + $0x104] ss:$16 sps:$4 sm:$0xff]   ;;  %v140_v11 = vld [vmem:[#allocation2 + $0x178] sm:$0xff]  ;;  %v3714_v13 = vcombine.high %v128_v4, %v132_v5 }
  0x66   :  { %v148_v18 = vld [vmem:[#allocation2 + $0x1b8] sm:$0xff]  ;;  %v4271_v29 = vld [vmem:[#allocation4 + $0x184] ss:$16 sps:$4 sm:$0xff]  }
  0x67   :  { %v152_v23 = vld [vmem:[#allocation2 + $0x1d8] sm:$0xff] }
  0x68   :  { %502 = vmatpush1.bf16.msra.mxu1 %v3723_v47  ;;  %608 = vmatpush1.bf16.msra.mxu0 %v3727_v12  ;;  %v3733_v47 = vcombine.low %v150_v35, %v154_v37  ;;  %v4253_v12 = vld [vmem:[#allocation4 + $0x124] ss:$16 sps:$4 sm:$0xff]   ;;  %v4202_v31 = vld [vmem:[#allocation4 + $0xc] ss:$16 sps:$4 sm:$0xff]   ;;  %v4224_v42 = vld [vmem:[#allocation4 + $0x88] ss:$16 sps:$4 sm:$0xff]  }
  0x69   :  { %503 = vmatprep.subr.bf16.mxu1 %v3732_v48  ;;  %609 = vmatprep.subr.bf16.mxu0 %v3736_v14  ;;  %v104_v48 = vld [vmem:[#allocation2 + $0x58] sm:$0xff]  ;;  %v4251_v14 = vld [vmem:[#allocation4 + $0x120] ss:$16 sps:$4 sm:$0xff]  }
  0x6a   :  { %v3690_v58 = vcombine.high %v104_v48, %v108_v49  ;;  %v3689_v60 = vcombine.low %v104_v48, %v108_v49  ;;  %v4208_v35 = vld [vmem:[#allocation4 + $0x2c] ss:$16 sps:$4 sm:$0xff]   ;;  %v4242_v49 = vld [vmem:[#allocation4 + $0xe8] ss:$16 sps:$4 sm:$0xff]  }
  0x6b   :  { %v4214_v37 = vld [vmem:[#allocation4 + $0x4c] ss:$16 sps:$4 sm:$0xff]  }
  0x6c   :  { %504 = vmatpush1.bf16.msra.mxu1 %v3731_v55  ;;  %610 = vmatpush1.bf16.msra.mxu0 %v3735_v20  ;;  %v116_v55 = vld [vmem:[#allocation2 + $0xb8] sm:$0xff] }
  0x6d   :  { %542 = vmatprep.subr.bf16.mxu1 %v3678_v57  ;;  %2408 = vmatprep.subr.bf16.mxu0 %v4199_v21  ;;  %v4235_v57 = vld [vmem:[#allocation4 + $0xc4] ss:$16 sps:$4 sm:$0xff]   ;;  %v3697_v3 = vcombine.low %v112_v54, %v116_v55  ;;  %v4257_v21 = vld [vmem:[#allocation4 + $0x140] ss:$16 sps:$4 sm:$0xff]   ;;  %v4226_v41 = vld [vmem:[#allocation4 + $0x8c] ss:$16 sps:$4 sm:$0xff]  }
  0x6e   :  { %v4244_v48 = vld [vmem:[#allocation4 + $0xec] ss:$16 sps:$4 sm:$0xff]  }
  0x6f   :  { %522 = vmatmul.mubr.bf16.vlgmr.msra.gmra.mrb[0].mxu1 %v4905_v56  ;;  %628 = vmatmul.mubr.bf16.vlgmr.msra.gmra.mrb[0].mxu0 %v4905_v56 }
  0x70   :  { %543 = vmatpush1.bf16.msra.mxu1 %v3677_v1  ;;  %531 = vmatprep.mubr.bf16.mxu1 %v4800_v0  ;;  %v3698_v1 = vcombine.high %v112_v54, %v116_v55  ;;  %v4295_v54 = vld [vmem:[#allocation4 + $0x204] ss:$16 sps:$4 sm:$0xff]   ;;  %v4256_v55 = vld [vmem:[#allocation4 + $0x12c] ss:$16 sps:$4 sm:$0xff]  }
  0x71   :  { %544 = vmatprep.subr.bf16.mxu1 %v3686_v2  ;;  %2409 = vmatpush1.bf16.msra.mxu0 %v4197_v26  ;;  %v4239_v2 = vld [vmem:[#allocation4 + $0xe0] ss:$16 sps:$4 sm:$0xff]  }
  0x72   :  { %2410 = vmatprep.subr.bf16.mxu0 %v4205_v27  ;;  %637 = vmatprep.mubr.bf16.mxu0 %v4800_v0  ;;  %v4263_v27 = vld [vmem:[#allocation4 + $0x160] ss:$16 sps:$4 sm:$0xff]  }
  0x74   :  { %545 = vmatpush1.bf16.msra.mxu1 %v3685_v9  ;;  %v3705_v9 = vcombine.low %v120_v61, %v124_v62  ;;  %v4266_v61 = vld [vmem:[#allocation4 + $0x168] ss:$16 sps:$4 sm:$0xff]   ;;  %v4274_v62 = vld [vmem:[#allocation4 + $0x18c] ss:$16 sps:$4 sm:$0xff]  }
  0x75   :  { %546 = vmatprep.subr.bf16.mxu1 %v3694_v10  ;;  %2411 = vmatpush1.bf16.msra.mxu0 %v4203_v32  ;;  %v136_v10 = vld [vmem:[#allocation2 + $0x158] sm:$0xff]  ;;  %v4269_v32 = vld [vmem:[#allocation4 + $0x180] ss:$16 sps:$4 sm:$0xff]  }
  0x76   :  { %2412 = vmatprep.subr.bf16.mxu0 %v4211_v33  ;;  %v3722_v20 = vcombine.high %v136_v10, %v140_v11 }
  0x77   :  { %532 = vmatmul.mubr.bf16.gmra.mrb[4].mxu1 %v4912_v15  ;;  %638 = vmatmul.mubr.bf16.gmra.mrb[4].mxu0 %v4912_v15 }
  0x78   :  { %547 = vmatpush1.bf16.msra.mxu1 %v3693_v16  ;;  %574 = vmatprep.mubr.bf16.mxu1 %v4800_v0  ;;  %v3713_v16 = vcombine.low %v128_v4, %v132_v5  ;;  %v4284_v4 = vld [vmem:[#allocation4 + $0x1c8] ss:$16 sps:$4 sm:$0xff]   ;;  %v4292_v5 = vld [vmem:[#allocation4 + $0x1ec] ss:$16 sps:$4 sm:$0xff]  }
  0x79   :  { %548 = vmatprep.subr.bf16.mxu1 %v3702_v17  ;;  %2413 = vmatpush1.bf16.msra.mxu0 %v4209_v38  ;;  %v144_v17 = vld [vmem:[#allocation2 + $0x198] sm:$0xff] }
  0x7a   :  { %2414 = vmatprep.subr.bf16.mxu0 %v4217_v39  ;;  %v3730_v26 = vcombine.high %v144_v17, %v148_v18  ;;  %v4212_v38 = vld [vmem:[#allocation4 + $0x48] ss:$16 sps:$4 sm:$0xff]   ;;  %v4220_v39 = vld [vmem:[#allocation4 + $0x6c] ss:$16 sps:$4 sm:$0xff]  }
  0x7c   :  { %549 = vmatpush1.bf16.msra.mxu1 %v3701_v22  ;;  %v3721_v22 = vcombine.low %v136_v10, %v140_v11  ;;  %v723_v10 = vlaneseq }
  0x7d   :  { %550 = vmatprep.subr.bf16.mxu1 %v3710_v24  ;;  %2415 = vmatpush1.bf16.msra.mxu0 %v4215_v44  ;;  %v156_v24 = vld [vmem:[#allocation2 + $0x1f8] sm:$0xff]  ;;  %v4277_v44 = vld [vmem:[#allocation4 + $0x1a4] ss:$16 sps:$4 sm:$0xff]  }
  0x7e   :  { %2416 = vmatprep.subr.bf16.mxu0 %v4223_v45  ;;  %v3737_v33 = vcombine.low %v152_v23, %v156_v24  ;;  %v4275_v45 = vld [vmem:[#allocation4 + $0x1a0] ss:$16 sps:$4 sm:$0xff]  }
  0x80   :  { %551 = vmatpush1.bf16.msra.mxu1 %v3709_v28  ;;  %v3729_v28 = vcombine.low %v144_v17, %v148_v18 }
  0x81   :  { %552 = vmatprep.subr.bf16.mxu1 %v3718_v30  ;;  %2417 = vmatpush1.bf16.msra.mxu0 %v4221_v46  ;;  %v3738_v30 = vcombine.high %v152_v23, %v156_v24  ;;  %v4236_v46 = vld [vmem:[#allocation4 + $0xc8] ss:$16 sps:$4 sm:$0xff]  }
  0x82   :  { %2418 = vmatprep.subr.bf16.mxu0 %v4229_v50  ;;  %v4289_v50 = vld [vmem:[#allocation4 + $0x1e4] ss:$16 sps:$4 sm:$0xff]  }
  0x84   :  { %553 = vmatpush1.bf16.msra.mxu1 %v3717_v34  ;;  %v4200_v34 = vld [vmem:[#allocation4 + $0x8] ss:$16 sps:$4 sm:$0xff]  }
  0x85   :  { %554 = vmatprep.subr.bf16.mxu1 %v3726_v36  ;;  %2419 = vmatpush1.bf16.msra.mxu0 %v4227_v52  ;;  %v4206_v36 = vld [vmem:[#allocation4 + $0x28] ss:$16 sps:$4 sm:$0xff]   ;;  %v4287_v52 = vld [vmem:[#allocation4 + $0x1e0] ss:$16 sps:$4 sm:$0xff]  }
  0x86   :  { %2420 = vmatprep.subr.bf16.mxu0 %v4235_v57  ;;  %v4254_v57 = vld [vmem:[#allocation4 + $0x128] ss:$16 sps:$4 sm:$0xff]  }
  0x88   :  { %555 = vmatpush1.bf16.msra.mxu1 %v3725_v40  ;;  %v4218_v40 = vld [vmem:[#allocation4 + $0x68] ss:$16 sps:$4 sm:$0xff]  }
  0x89   :  { %556 = vmatprep.subr.bf16.mxu1 %v3734_v43  ;;  %2421 = vmatpush1.bf16.msra.mxu0 %v4233_v59  ;;  %v4232_v43 = vld [vmem:[#allocation4 + $0xac] ss:$16 sps:$4 sm:$0xff]   ;;  %v4260_v59 = vld [vmem:[#allocation4 + $0x148] ss:$16 sps:$4 sm:$0xff]  }
  0x8a   :  { %2422 = vmatprep.subr.bf16.mxu0 %v4241_v63  ;;  %v4272_v63 = vld [vmem:[#allocation4 + $0x188] ss:$16 sps:$4 sm:$0xff]  }
  0x8c   :  { %557 = vmatpush1.bf16.msra.mxu1 %v3733_v47  ;;  %v4283_v47 = vld [vmem:[#allocation4 + $0x1c4] ss:$16 sps:$4 sm:$0xff]  }
  0x8d   :  { %648 = vmatprep.subr.bf16.mxu1 %v3682_v51  ;;  %2423 = vmatpush1.bf16.msra.mxu0 %v4239_v2  ;;  %v4250_v51 = vld [vmem:[#allocation4 + $0x10c] ss:$16 sps:$4 sm:$0xff]   ;;  %v4278_v2 = vld [vmem:[#allocation4 + $0x1a8] ss:$16 sps:$4 sm:$0xff]  }
  0x8e   :  { %2424 = vmatprep.subr.bf16.mxu0 %v4247_v6  ;;  %v4290_v6 = vld [vmem:[#allocation4 + $0x1e8] ss:$16 sps:$4 sm:$0xff]  }
  0x8f   :  { %575 = vmatmul.mubr.bf16.vlgmr.msra.gmra.mrb[8].mxu1 %v4905_v56 }
  0x90   :  { %584 = vmatprep.mubr.bf16.mxu1 %v4800_v0  ;;  %649 = vmatpush1.bf16.msra.mxu1 %v3681_v53  ;;  %v4248_v53 = vld [vmem:[#allocation4 + $0x108] ss:$16 sps:$4 sm:$0xff]  }
  0x91   :  { %650 = vmatprep.subr.bf16.mxu1 %v3690_v58  ;;  %2425 = vmatpush1.bf16.msra.mxu0 %v4245_v8  ;;  %v4262_v58 = vld [vmem:[#allocation4 + $0x14c] ss:$16 sps:$4 sm:$0xff]   ;;  %v4801_v8 = vmov 1966171168  }
  0x92   :  { %2426 = vmatprep.subr.bf16.mxu0 %v4253_v12  ;;  %v724_v12 = vshrl.u32 %v723_v10, 7  ;;  %v4328_v10 = vld [vmem:[#allocation4 + $0x2ac] ss:$16 sps:$4 sm:$0xff]  }
  0x94   :  { %651 = vmatpush1.bf16.msra.mxu1 %v3689_v60  ;;  %v4268_v60 = vld [vmem:[#allocation4 + $0x16c] ss:$16 sps:$4 sm:$0xff]  }
  0x95   :  { %652 = vmatprep.subr.bf16.mxu1 %v3698_v1  ;;  %2427 = vmatpush1.bf16.msra.mxu0 %v4251_v14  ;;  %v4280_v1 = vld [vmem:[#allocation4 + $0x1ac] ss:$16 sps:$4 sm:$0xff]   ;;  %v4931_v14 = vld [vmem:[%s5156_s2] sm:$0xff] }
  0x96   :  { %2428 = vmatprep.subr.bf16.mxu0 %v4259_v19 }
  0x97   :  { %585 = vmatmul.mubr.bf16.gmra.mrb[12].mxu1 %v4912_v15 }
  0x98   :  { %653 = vmatpush1.bf16.msra.mxu1 %v3697_v3  ;;  %680 = vmatprep.mubr.bf16.mxu1 %v4800_v0  ;;  %v4286_v3 = vld [vmem:[#allocation4 + $0x1cc] ss:$16 sps:$4 sm:$0xff]  }
  0x99   :  { %654 = vmatprep.subr.bf16.mxu1 %v3706_v7  ;;  %2429 = vmatpush1.bf16.msra.mxu0 %v4257_v21  ;;  %v4298_v7 = vld [vmem:[#allocation4 + $0x20c] ss:$16 sps:$4 sm:$0xff]   ;;  %v4943_v21 = vsub.s32 0, %v724_v12 }
  0x9a   :  { %2430 = vmatprep.subr.bf16.mxu0 %v4265_v25 }
  0x9c   :  { %655 = vmatpush1.bf16.msra.mxu1 %v3705_v9  ;;  %v721_v9 = vunpack.c.l.s4 %v4801_v8 }
  0x9d   :  { %656 = vmatprep.subr.bf16.mxu1 %v3714_v13  ;;  %2431 = vmatpush1.bf16.msra.mxu0 %v4263_v27 }
  0x9e   :  { %2432 = vmatprep.subr.bf16.mxu0 %v4271_v29  ;;  %v722_v11 = vunpack.c.0.s8 %v721_v9  ;;  %v4325_v9 = vld [vmem:[#allocation4 + $0x2a4] ss:$16 sps:$4 sm:$0xff]  }
  0xa0   :  { %657 = vmatpush1.bf16.msra.mxu1 %v3713_v16  ;;  %v4926_v13 = vsub.s32 %v722_v11, %v724_v12  ;;  %v4323_v11 = vld [vmem:[#allocation4 + $0x2a0] ss:$16 sps:$4 sm:$0xff]   ;;  %v4326_v12 = vld [vmem:[#allocation4 + $0x2a8] ss:$16 sps:$4 sm:$0xff]  }
  0xa1   :  { %658 = vmatprep.subr.bf16.mxu1 %v3722_v20  ;;  %2433 = vmatpush1.bf16.msra.mxu0 %v4269_v32 }
  0xa2   :  { %2434 = vmatprep.subr.bf16.mxu0 %v4277_v44  ;;  %v726_v16 = vrot.slane %v4931_v14, %v4926_v13 }
  0xa4   :  { %659 = vmatpush1.bf16.msra.mxu1 %v3721_v22  ;;  %v734_v17 = vcombine.high %v726_v16, %v726_v16  ;;  %v4936_v18 = vrot.slane %v726_v16, %v4926_v13 }
  0xa5   :  { %660 = vmatprep.subr.bf16.mxu1 %v3730_v26  ;;  %2435 = vmatpush1.bf16.msra.mxu0 %v4275_v45  ;;  %v4299_v45 = vld [vmem:[#allocation4 + $0x220] ss:$16 sps:$4 sm:$0xff]  }
  0xa6   :  { %2436 = vmatprep.subr.bf16.mxu0 %v4283_v47  ;;  %v4939_v19 = vrot.slane %v734_v17, %v4926_v13  ;;  %v769_v20 = vpack.i.b16 %v4936_v18, %v4936_v18  ;;  %v4331_v17 = vld [vmem:[#allocation4 + $0x2c4] ss:$16 sps:$4 sm:$0xff]  }
  0xa8   :  { %661 = vmatpush1.bf16.msra.mxu1 %v3729_v28  ;;  %v776_v22 = vpack.i.b16 %v4939_v19, %v4939_v19  ;;  %v774_v25 = vrot.slane %v769_v20, %v4943_v21  ;;  %v766_v8 = vcombine.high %v4939_v19, %v4939_v19  ;;  %v4334_v20 = vld [vmem:[#allocation4 + $0x2cc] ss:$16 sps:$4 sm:$0xff]   ;;  %v4332_v19 = vld [vmem:[#allocation4 + $0x2c8] ss:$16 sps:$4 sm:$0xff]  }
  0xa9   :  { %662 = vmatprep.subr.bf16.mxu1 %v3738_v30 }
  0xaa   :  { %v781_v27 = vrot.slane %v776_v22, %v4943_v21  ;;  %v790_v16 = vpack.i.b16 %v766_v8, %v766_v8  ;;  %v4370_v8 = vld [vmem:[#allocation4 + $0x38c] ss:$16 sps:$4 sm:$0xff]  }
  0xac   :  { %663 = vmatpush1.bf16.msra.mxu1 %v3737_v33 }
  0xad   :  { %2620 = vmatprep.subr.bf16.mxu1 %v4202_v31 }
  0xaf   :  { %681 = vmatmul.mubr.bf16.vlgmr.msra.gmra.mrb[16].mxu1 %v4905_v56  ;;  %v4230_v56 = vld [vmem:[#allocation4 + $0xa8] ss:$16 sps:$4 sm:$0xff]  }
  0xb0   :  { %2621 = vmatpush1.bf16.msra.mxu1 %v4200_v34  ;;  %690 = vmatprep.mubr.bf16.mxu1 %v4800_v0  ;;  %v4238_v0 = vld [vmem:[#allocation4 + $0xcc] ss:$16 sps:$4 sm:$0xff]  }
  0xb1   :  { %2622 = vmatprep.subr.bf16.mxu1 %v4208_v35 }
  0xb4   :  { %2623 = vmatpush1.bf16.msra.mxu1 %v4206_v36 }
  0xb5   :  { %2624 = vmatprep.subr.bf16.mxu1 %v4214_v37 }
  0xb7   :  { %691 = vmatmul.mubr.bf16.gmra.mrb[20].mxu1 %v4912_v15  ;;  %v4281_v15 = vld [vmem:[#allocation4 + $0x1c0] ss:$16 sps:$4 sm:$0xff]  }
  0xb8   :  { %2625 = vmatpush1.bf16.msra.mxu1 %v4212_v38  ;;  %2437 = vmatpush1.bf16.msra.mxu0 %v4281_v15  ;;  %v4293_v38 = vld [vmem:[#allocation4 + $0x200] ss:$16 sps:$4 sm:$0xff]   ;;  %v4307_v15 = vld [vmem:[#allocation4 + $0x244] ss:$16 sps:$4 sm:$0xff]  }
  0xb9   :  { %2626 = vmatprep.subr.bf16.mxu1 %v4220_v39  ;;  %2438 = vmatprep.subr.bf16.mxu0 %v4289_v50  ;;  %v4296_v39 = vld [vmem:[#allocation4 + $0x208] ss:$16 sps:$4 sm:$0xff]  }
  0xbc   :  { %2627 = vmatpush1.bf16.msra.mxu1 %v4218_v40  ;;  %2439 = vmatpush1.bf16.msra.mxu0 %v4287_v52 }
  0xbd   :  { %2628 = vmatprep.subr.bf16.mxu1 %v4226_v41  ;;  %2461 = vmatprep.subr.bf16.mxu0 %v4295_v54 }
  0xc0   :  { %2629 = vmatpush1.bf16.msra.mxu1 %v4224_v42  ;;  %v4301_v42 = vld [vmem:[#allocation4 + $0x224] ss:$16 sps:$4 sm:$0xff]  }
  0xc1   :  { %2630 = vmatprep.subr.bf16.mxu1 %v4232_v43  ;;  %v4304_v43 = vld [vmem:[#allocation4 + $0x22c] ss:$16 sps:$4 sm:$0xff]  }
  0xc4   :  { %2631 = vmatpush1.bf16.msra.mxu1 %v4230_v56 }
  0xc5   :  { %2632 = vmatprep.subr.bf16.mxu1 %v4238_v0 }
  0xc8   :  { %2633 = vmatpush1.bf16.msra.mxu1 %v4236_v46 }
  0xc9   :  { %2634 = vmatprep.subr.bf16.mxu1 %v4244_v48  ;;  %v4302_v48 = vld [vmem:[#allocation4 + $0x228] ss:$16 sps:$4 sm:$0xff]  }
  0xcc   :  { %2635 = vmatpush1.bf16.msra.mxu1 %v4242_v49 }
  0xcd   :  { %2636 = vmatprep.subr.bf16.mxu1 %v4250_v51  ;;  %v4310_v51 = vld [vmem:[#allocation4 + $0x24c] ss:$16 sps:$4 sm:$0xff]  }
  0xd0   :  { %2637 = vmatpush1.bf16.msra.mxu1 %v4248_v53 }
  0xd1   :  { %2638 = vmatprep.subr.bf16.mxu1 %v4256_v55 }
  0xd4   :  { %2639 = vmatpush1.bf16.msra.mxu1 %v4254_v57 }
  0xd5   :  { %2640 = vmatprep.subr.bf16.mxu1 %v4262_v58 }
  0xd8   :  { %2641 = vmatpush1.bf16.msra.mxu1 %v4260_v59 }
  0xd9   :  { %2642 = vmatprep.subr.bf16.mxu1 %v4268_v60  ;;  %v4305_v60 = vld [vmem:[#allocation4 + $0x240] ss:$16 sps:$4 sm:$0xff]  }
  0xdc   :  { %2643 = vmatpush1.bf16.msra.mxu1 %v4266_v61  ;;  %v4308_v61 = vld [vmem:[#allocation4 + $0x248] ss:$16 sps:$4 sm:$0xff]  }
  0xdd   :  { %2644 = vmatprep.subr.bf16.mxu1 %v4274_v62 }
  0xe0   :  { %2645 = vmatpush1.bf16.msra.mxu1 %v4272_v63  ;;  %v4313_v63 = vld [vmem:[#allocation4 + $0x264] ss:$16 sps:$4 sm:$0xff]  }
  0xe1   :  { %2646 = vmatprep.subr.bf16.mxu1 %v4280_v1  ;;  %v4316_v1 = vld [vmem:[#allocation4 + $0x26c] ss:$16 sps:$4 sm:$0xff]  }
  0xe4   :  { %2647 = vmatpush1.bf16.msra.mxu1 %v4278_v2  ;;  %v4311_v2 = vld [vmem:[#allocation4 + $0x260] ss:$16 sps:$4 sm:$0xff]  }
  0xe5   :  { %2648 = vmatprep.subr.bf16.mxu1 %v4286_v3  ;;  %v4314_v3 = vld [vmem:[#allocation4 + $0x268] ss:$16 sps:$4 sm:$0xff]  }
  0xe8   :  { %2649 = vmatpush1.bf16.msra.mxu1 %v4284_v4  ;;  %v4319_v4 = vld [vmem:[#allocation4 + $0x284] ss:$16 sps:$4 sm:$0xff]  }
  0xe9   :  { %2650 = vmatprep.subr.bf16.mxu1 %v4292_v5  ;;  %v4322_v5 = vld [vmem:[#allocation4 + $0x28c] ss:$16 sps:$4 sm:$0xff]  }
  0xec   :  { %2651 = vmatpush1.bf16.msra.mxu1 %v4290_v6  ;;  %v4317_v6 = vld [vmem:[#allocation4 + $0x280] ss:$16 sps:$4 sm:$0xff]  }
  0xed   :  { %2673 = vmatprep.subr.bf16.mxu1 %v4298_v7  ;;  %v4320_v7 = vld [vmem:[#allocation4 + $0x288] ss:$16 sps:$4 sm:$0xff]  }
 0x142   :  { %v523_v23 = vpop.f32.mrb[0].mxu1  ;;  %v4949_v47 = vpop.f32.mrb[0].mxu0 }
 0x143   :  { %v525_v24 = vpop.f32.mrb[1].mxu1  ;;  %v4951_v50 = vpop.f32.mrb[1].mxu0 }
 0x144   :  { %v527_v26 = vpop.f32.mrb[2].mxu1  ;;  %v4953_v53 = vpop.f32.mrb[2].mxu0 }
 0x145   :  { %v701_v28 = vpack.c.bf16 %v527_v26, %v523_v23  ;;  %v529_v29 = vpop.f32.mrb[3].mxu1  ;;  %v705_v55 = vpack.c.bf16 %v4953_v53, %v4949_v47  ;;  %v4957_v57 = vpop.f32.mrb[3].mxu0  ;;  %v4968_v26 = vrot.slane %v790_v16, %v4943_v21  ;;  %v4373_v16 = vld [vmem:[#allocation4 + $0x3a4] ss:$16 sps:$4 sm:$0xff]   ;;  %v4491_v47 = vld [vmem:[#allocation4 + $0x60c] ss:$16 sps:$4 sm:$0xff]  }
 0x146   :  { %v702_v30 = vpack.c.bf16 %v529_v29, %v525_v24  ;;  %v706_v59 = vpack.c.bf16 %v4957_v57, %v4951_v50  ;;  %v4329_v24 = vld [vmem:[#allocation4 + $0x2c0] ss:$16 sps:$4 sm:$0xff]  }
 0x147   :  { %v824_v31 = vadd.bf16 %v774_v25, %v701_v28  ;;  %v4340_v28 = vld [vmem:[#allocation4 + $0x2ec] ss:$16 sps:$4 sm:$0xff]   ;;  %v4401_v57 = vld [vmem:[#allocation4 + $0x440] ss:$16 sps:$4 sm:$0xff]  }
 0x148   :  { %v825_v32 = vadd.bf16 %v781_v27, %v702_v30 }
 0x149   :  { %v840_v33 = vmul.bf16 1045249613, %v824_v31 }
 0x14a   :  { %v841_v34 = vmul.bf16 1045249613, %v825_v32  ;;  %v533_v35 = vpop.f32.mrb[4].mxu1 }
 0x14b   :  { %v535_v36 = vpop.f32.mrb[5].mxu1  ;;  %v856_v41 = vmax.bf16 %v840_v33, %v824_v31  ;;  %v4338_v33 = vld [vmem:[#allocation4 + $0x2e8] ss:$16 sps:$4 sm:$0xff]  }
 0x14c   :  { %v857_v37 = vmax.bf16 %v841_v34, %v825_v32  ;;  %v537_v40 = vpop.f32.mrb[6].mxu1  ;;  %v4335_v32 = vld [vmem:[#allocation4 + $0x2e0] ss:$16 sps:$4 sm:$0xff]  }
 0x14d   :  { %v709_v56 = vpack.c.bf16 %v537_v40, %v533_v35  ;;  %v539_v44 = vpop.f32.mrb[7].mxu1  ;;  %v4343_v35 = vld [vmem:[#allocation4 + $0x304] ss:$16 sps:$4 sm:$0xff]   ;;  %v4341_v40 = vld [vmem:[#allocation4 + $0x300] ss:$16 sps:$4 sm:$0xff]  }
 0x14e   :  { %2440 = vmatprep.mubr.bf16.mxu0 %v857_v37  ;;  %2652 = vmatprep.mubr.bf16.mxu1 %v857_v37  ;;  %v710_v0 = vpack.c.bf16 %v539_v44, %v535_v36  ;;  %v4346_v36 = vld [vmem:[#allocation4 + $0x30c] ss:$16 sps:$4 sm:$0xff]  }
 0x14f   :  { %2441 = vmatmul.mubr.bf16.vlgmr.msra.gmra.mrb[8].mxu0 %v856_v41  ;;  %2653 = vmatmul.mubr.bf16.vlgmr.msra.gmra.mrb[24].mxu1 %v856_v41  ;;  %v832_v46 = vadd.bf16 %v774_v25, %v709_v56  ;;  %v4344_v41 = vld [vmem:[#allocation4 + $0x308] ss:$16 sps:$4 sm:$0xff]   ;;  %v4349_v56 = vld [vmem:[#allocation4 + $0x324] ss:$16 sps:$4 sm:$0xff]   ;;  %v4352_v44 = vld [vmem:[#allocation4 + $0x32c] ss:$16 sps:$4 sm:$0xff]  }
 0x150   :  { %2462 = vmatpush1.bf16.msra.mxu0 %v4293_v38  ;;  %2674 = vmatpush1.bf16.msra.mxu1 %v4296_v39  ;;  %v833_v49 = vadd.bf16 %v781_v27, %v710_v0  ;;  %v4337_v27 = vld [vmem:[#allocation4 + $0x2e4] ss:$16 sps:$4 sm:$0xff]  }
 0x151   :  { %2463 = vmatprep.subr.bf16.mxu0 %v4301_v42  ;;  %2675 = vmatprep.subr.bf16.mxu1 %v4304_v43  ;;  %v848_v52 = vmul.bf16 1045249613, %v832_v46 }
 0x152   :  { %v849_v54 = vmul.bf16 1045249613, %v833_v49 }
 0x153   :  { %v864_v58 = vmax.bf16 %v848_v52, %v832_v46  ;;  %v4985_v52 = vpop.f32.mrb[4].mxu0 }
 0x154   :  { %2464 = vmatpush1.bf16.msra.mxu0 %v4299_v45  ;;  %2676 = vmatpush1.bf16.msra.mxu1 %v4302_v48  ;;  %v865_v62 = vmax.bf16 %v849_v54, %v833_v49  ;;  %v4347_v48 = vld [vmem:[#allocation4 + $0x320] ss:$16 sps:$4 sm:$0xff]   ;;  %v4355_v49 = vld [vmem:[#allocation4 + $0x344] ss:$16 sps:$4 sm:$0xff]  }
 0x155   :  { %2465 = vmatprep.subr.bf16.mxu0 %v4307_v15  ;;  %2677 = vmatprep.subr.bf16.mxu1 %v4310_v51  ;;  %v4350_v15 = vld [vmem:[#allocation4 + $0x328] ss:$16 sps:$4 sm:$0xff]   ;;  %v4358_v51 = vld [vmem:[#allocation4 + $0x34c] ss:$16 sps:$4 sm:$0xff]   ;;  %v4353_v54 = vld [vmem:[#allocation4 + $0x340] ss:$16 sps:$4 sm:$0xff]  }
 0x156   :  { %2450 = vmatprep.mubr.bf16.mxu0 %v865_v62  ;;  %2662 = vmatprep.mubr.bf16.mxu1 %v865_v62  ;;  %v4364_v62 = vld [vmem:[#allocation4 + $0x36c] ss:$16 sps:$4 sm:$0xff]  }
 0x157   :  { %2451 = vmatmul.mubr.bf16.gmra.mrb[12].mxu0 %v864_v58  ;;  %2663 = vmatmul.mubr.bf16.gmra.mrb[28].mxu1 %v864_v58  ;;  %v4356_v58 = vld [vmem:[#allocation4 + $0x348] ss:$16 sps:$4 sm:$0xff]  }
 0x158   :  { %2466 = vmatpush1.bf16.msra.mxu0 %v4305_v60  ;;  %2678 = vmatpush1.bf16.msra.mxu1 %v4308_v61  ;;  %v4987_v60 = vpop.f32.mrb[5].mxu0  ;;  %v4361_v61 = vld [vmem:[#allocation4 + $0x364] ss:$16 sps:$4 sm:$0xff]  }
 0x159   :  { %2467 = vmatprep.subr.bf16.mxu0 %v4313_v63  ;;  %2679 = vmatprep.subr.bf16.mxu1 %v4316_v1  ;;  %v4989_v63 = vpop.f32.mrb[6].mxu0  ;;  %v719_v1 = vcombine.high %v4931_v14, %v4931_v14 }
 0x15b   :  { %v5002_v14 = vrot.slane %v719_v1, %v4926_v13  ;;  %v4400_v1 = vld [vmem:[#allocation4 + $0x42c] ss:$16 sps:$4 sm:$0xff]  }
 0x15c   :  { %2468 = vmatpush1.bf16.msra.mxu0 %v4311_v2  ;;  %2680 = vmatpush1.bf16.msra.mxu1 %v4314_v3  ;;  %v713_v2 = vpack.c.bf16 %v4989_v63, %v4985_v52  ;;  %v4995_v3 = vpop.f32.mrb[7].mxu0  ;;  %v4492_v52 = vld [vmem:[#allocation4 + $0x620] ss:$16 sps:$4 sm:$0xff]   ;;  %v4495_v63 = vld [vmem:[#allocation4 + $0x628] ss:$16 sps:$4 sm:$0xff]  }
 0x15d   :  { %2469 = vmatprep.subr.bf16.mxu0 %v4319_v4  ;;  %2681 = vmatprep.subr.bf16.mxu1 %v4322_v5  ;;  %v714_v4 = vpack.c.bf16 %v4995_v3, %v4987_v60  ;;  %v4359_v5 = vld [vmem:[#allocation4 + $0x360] ss:$16 sps:$4 sm:$0xff]  }
 0x15e   :  { %v4486_v3 = vld [vmem:[#allocation4 + $0x600] ss:$16 sps:$4 sm:$0xff]  }
 0x160   :  { %2470 = vmatpush1.bf16.msra.mxu0 %v4317_v6  ;;  %2682 = vmatpush1.bf16.msra.mxu1 %v4320_v7  ;;  %v4362_v6 = vld [vmem:[#allocation4 + $0x368] ss:$16 sps:$4 sm:$0xff]   ;;  %v4367_v7 = vld [vmem:[#allocation4 + $0x384] ss:$16 sps:$4 sm:$0xff]  }
 0x161   :  { %2471 = vmatprep.subr.bf16.mxu0 %v4325_v9  ;;  %2683 = vmatprep.subr.bf16.mxu1 %v4328_v10  ;;  %v764_v9 = vcombine.high %v4936_v18, %v4936_v18  ;;  %v4365_v10 = vld [vmem:[#allocation4 + $0x380] ss:$16 sps:$4 sm:$0xff]  }
 0x162   :  { %v4963_v22 = vpop.f32.mrb[8].mxu1 }
 0x163   :  { %v578_v23 = vpop.f32.mrb[9].mxu1 }
 0x164   :  { %2472 = vmatpush1.bf16.msra.mxu0 %v4323_v11  ;;  %2684 = vmatpush1.bf16.msra.mxu1 %v4326_v12  ;;  %v4965_v25 = vpop.f32.mrb[10].mxu1  ;;  %v4368_v11 = vld [vmem:[#allocation4 + $0x388] ss:$16 sps:$4 sm:$0xff]   ;;  %v783_v12 = vpack.i.b16 %v764_v9, %v764_v9 }
 0x165   :  { %2473 = vmatprep.subr.bf16.mxu0 %v4331_v17  ;;  %2685 = vmatprep.subr.bf16.mxu1 %v4334_v20  ;;  %v703_v29 = vpack.c.bf16 %v4965_v25, %v4963_v22  ;;  %v582_v30 = vpop.f32.mrb[11].mxu1  ;;  %v4376_v17 = vld [vmem:[#allocation4 + $0x3ac] ss:$16 sps:$4 sm:$0xff]   ;;  %v735_v20 = vcombine.high %v5002_v14, %v5002_v14  ;;  %v4383_v25 = vld [vmem:[#allocation4 + $0x3e0] ss:$16 sps:$4 sm:$0xff]  }
 0x166   :  { %v704_v31 = vpack.c.bf16 %v582_v30, %v578_v23  ;;  %v4371_v23 = vld [vmem:[#allocation4 + $0x3a0] ss:$16 sps:$4 sm:$0xff]   ;;  %v788_v18 = vrot.slane %v783_v12, %v4943_v21  ;;  %v4398_v9 = vld [vmem:[#allocation4 + $0x428] ss:$16 sps:$4 sm:$0xff]  }
 0x168   :  { %2474 = vmatpush1.bf16.msra.mxu0 %v4329_v24  ;;  %2686 = vmatpush1.bf16.msra.mxu1 %v4332_v19  ;;  %v827_v34 = vadd.bf16 %v4968_v26, %v704_v31  ;;  %v4374_v24 = vld [vmem:[#allocation4 + $0x3a8] ss:$16 sps:$4 sm:$0xff]   ;;  %v4379_v19 = vld [vmem:[#allocation4 + $0x3c4] ss:$16 sps:$4 sm:$0xff]  }
 0x169   :  { %2475 = vmatprep.subr.bf16.mxu0 %v4337_v27  ;;  %2687 = vmatprep.subr.bf16.mxu1 %v4340_v28  ;;  %v4382_v27 = vld [vmem:[#allocation4 + $0x3cc] ss:$16 sps:$4 sm:$0xff]   ;;  %v5008_v28 = vrot.slane %v735_v20, %v4926_v13 }
 0x16a   :  { %v843_v37 = vmul.bf16 1045249613, %v827_v34  ;;  %v4973_v38 = vpop.f32.mrb[12].mxu1 }
 0x16b   :  { %v4975_v39 = vpop.f32.mrb[13].mxu1 }
 0x16c   :  { %2476 = vmatpush1.bf16.msra.mxu0 %v4335_v32  ;;  %2688 = vmatpush1.bf16.msra.mxu1 %v4338_v33  ;;  %v859_v42 = vmax.bf16 %v843_v37, %v827_v34  ;;  %v4977_v43 = vpop.f32.mrb[14].mxu1  ;;  %v4377_v32 = vld [vmem:[#allocation4 + $0x3c0] ss:$16 sps:$4 sm:$0xff]   ;;  %v4380_v33 = vld [vmem:[#allocation4 + $0x3c8] ss:$16 sps:$4 sm:$0xff]  }
 0x16d   :  { %2477 = vmatprep.subr.bf16.mxu0 %v4343_v35  ;;  %2689 = vmatprep.subr.bf16.mxu1 %v4346_v36  ;;  %v711_v0 = vpack.c.bf16 %v4977_v43, %v4973_v38  ;;  %v4981_v45 = vpop.f32.mrb[15].mxu1  ;;  %v826_v35 = vadd.bf16 %v788_v18, %v703_v29  ;;  %v4385_v36 = vld [vmem:[#allocation4 + $0x3e4] ss:$16 sps:$4 sm:$0xff]   ;;  %v4388_v37 = vld [vmem:[#allocation4 + $0x3ec] ss:$16 sps:$4 sm:$0xff]  }
 0x16e   :  { %2493 = vmatprep.mubr.bf16.mxu0 %v859_v42  ;;  %2705 = vmatprep.mubr.bf16.mxu1 %v859_v42  ;;  %v712_v46 = vpack.c.bf16 %v4981_v45, %v4975_v39  ;;  %v4386_v29 = vld [vmem:[#allocation4 + $0x3e8] ss:$16 sps:$4 sm:$0xff]  }
 0x16f   :  { %v834_v45 = vadd.bf16 %v788_v18, %v711_v0  ;;  %v4415_v18 = vld [vmem:[#allocation4 + $0x484] ss:$16 sps:$4 sm:$0xff]  }
 0x170   :  { %2478 = vmatpush1.bf16.msra.mxu0 %v4341_v40  ;;  %2690 = vmatpush1.bf16.msra.mxu1 %v4344_v41  ;;  %v835_v42 = vadd.bf16 %v4968_v26, %v712_v46 }
 0x171   :  { %2479 = vmatprep.subr.bf16.mxu0 %v4349_v56  ;;  %2691 = vmatprep.subr.bf16.mxu1 %v4352_v44  ;;  %v804_v56 = vpack.i.b16 %v5008_v28, %v5008_v28  ;;  %v842_v44 = vmul.bf16 1045249613, %v826_v35 }
 0x173   :  { %v5032_v39 = vrot.slane %v804_v56, %v4943_v21  ;;  %v4430_v56 = vld [vmem:[#allocation4 + $0x4cc] ss:$16 sps:$4 sm:$0xff]  }
 0x174   :  { %2480 = vmatpush1.bf16.msra.mxu0 %v4347_v48  ;;  %2692 = vmatpush1.bf16.msra.mxu1 %v4350_v15  ;;  %v4391_v48 = vld [vmem:[#allocation4 + $0x404] ss:$16 sps:$4 sm:$0xff]   ;;  %v4394_v15 = vld [vmem:[#allocation4 + $0x40c] ss:$16 sps:$4 sm:$0xff]  }
 0x175   :  { %2481 = vmatprep.subr.bf16.mxu0 %v4355_v49  ;;  %2693 = vmatprep.subr.bf16.mxu1 %v4358_v51  ;;  %v851_v49 = vmul.bf16 1045249613, %v835_v42  ;;  %v4389_v51 = vld [vmem:[#allocation4 + $0x400] ss:$16 sps:$4 sm:$0xff]   ;;  %v829_v38 = vadd.bf16 %v5032_v39, %v706_v59  ;;  %v4404_v59 = vld [vmem:[#allocation4 + $0x448] ss:$16 sps:$4 sm:$0xff]  }
 0x177   :  { %v867_v43 = vmax.bf16 %v851_v49, %v835_v42  ;;  %v845_v12 = vmul.bf16 1045249613, %v829_v38  ;;  %v4427_v42 = vld [vmem:[#allocation4 + $0x4c4] ss:$16 sps:$4 sm:$0xff]   ;;  %v4434_v49 = vld [vmem:[#allocation4 + $0x4e8] ss:$16 sps:$4 sm:$0xff]  }
 0x178   :  { %2482 = vmatpush1.bf16.msra.mxu0 %v4353_v54  ;;  %2694 = vmatpush1.bf16.msra.mxu1 %v4356_v58  ;;  %v4392_v54 = vld [vmem:[#allocation4 + $0x408] ss:$16 sps:$4 sm:$0xff]  }
 0x179   :  { %2483 = vmatprep.subr.bf16.mxu0 %v4361_v61  ;;  %2695 = vmatprep.subr.bf16.mxu1 %v4364_v62  ;;  %v858_v61 = vmax.bf16 %v842_v44, %v826_v35  ;;  %v4397_v62 = vld [vmem:[#allocation4 + $0x424] ss:$16 sps:$4 sm:$0xff]   ;;  %v861_v20 = vmax.bf16 %v845_v12, %v829_v38  ;;  %v4424_v35 = vld [vmem:[#allocation4 + $0x4ac] ss:$16 sps:$4 sm:$0xff]   ;;  %v4443_v38 = vld [vmem:[#allocation4 + $0x520] ss:$16 sps:$4 sm:$0xff]  }
 0x17a   :  { %v4433_v44 = vld [vmem:[#allocation4 + $0x4e4] ss:$16 sps:$4 sm:$0xff]   ;;  %v4460_v12 = vld [vmem:[#allocation4 + $0x56c] ss:$16 sps:$4 sm:$0xff]  }
 0x17c   :  { %2484 = vmatpush1.bf16.msra.mxu0 %v4359_v5  ;;  %2696 = vmatpush1.bf16.msra.mxu1 %v4362_v6 }
 0x17d   :  { %2485 = vmatprep.subr.bf16.mxu0 %v4367_v7  ;;  %2697 = vmatprep.subr.bf16.mxu1 %v4370_v8  ;;  %v850_v7 = vmul.bf16 1045249613, %v834_v45  ;;  %v4395_v8 = vld [vmem:[#allocation4 + $0x420] ss:$16 sps:$4 sm:$0xff]  }
 0x17f   :  { %v866_v50 = vmax.bf16 %v850_v7, %v834_v45  ;;  %v4439_v45 = vld [vmem:[#allocation4 + $0x504] ss:$16 sps:$4 sm:$0xff]  }
 0x180   :  { %2486 = vmatpush1.bf16.msra.mxu0 %v4365_v10  ;;  %2698 = vmatpush1.bf16.msra.mxu1 %v4368_v11  ;;  %v4403_v10 = vld [vmem:[#allocation4 + $0x444] ss:$16 sps:$4 sm:$0xff]   ;;  %v4406_v11 = vld [vmem:[#allocation4 + $0x44c] ss:$16 sps:$4 sm:$0xff]  }
 0x181   :  { %2487 = vmatprep.subr.bf16.mxu0 %v4373_v16  ;;  %2699 = vmatprep.subr.bf16.mxu1 %v4376_v17  ;;  %v4409_v16 = vld [vmem:[#allocation4 + $0x464] ss:$16 sps:$4 sm:$0xff]   ;;  %v4412_v17 = vld [vmem:[#allocation4 + $0x46c] ss:$16 sps:$4 sm:$0xff]  }
 0x182   :  { %v5010_v30 = vpop.f32.mrb[16].mxu1  ;;  %v4451_v7 = vld [vmem:[#allocation4 + $0x544] ss:$16 sps:$4 sm:$0xff]  }
 0x183   :  { %v5012_v31 = vpop.f32.mrb[17].mxu1 }
 0x184   :  { %2488 = vmatpush1.bf16.msra.mxu0 %v4371_v23  ;;  %2700 = vmatpush1.bf16.msra.mxu1 %v4374_v24  ;;  %v5014_v34 = vpop.f32.mrb[18].mxu1  ;;  %v4407_v23 = vld [vmem:[#allocation4 + $0x460] ss:$16 sps:$4 sm:$0xff]   ;;  %v4410_v24 = vld [vmem:[#allocation4 + $0x468] ss:$16 sps:$4 sm:$0xff]  }
 0x185   :  { %2489 = vmatprep.subr.bf16.mxu0 %v4379_v19  ;;  %2701 = vmatprep.subr.bf16.mxu1 %v4382_v27  ;;  %v707_v40 = vpack.c.bf16 %v5014_v34, %v5010_v30  ;;  %v5021_v41 = vpop.f32.mrb[19].mxu1  ;;  %v4418_v19 = vld [vmem:[#allocation4 + $0x48c] ss:$16 sps:$4 sm:$0xff]   ;;  %v4413_v27 = vld [vmem:[#allocation4 + $0x480] ss:$16 sps:$4 sm:$0xff]  }
 0x186   :  { %v708_v22 = vpack.c.bf16 %v5021_v41, %v5012_v31  ;;  %v4498_v31 = vld [vmem:[#allocation4 + $0x640] ss:$16 sps:$4 sm:$0xff]   ;;  %v4501_v41 = vld [vmem:[#allocation4 + $0x648] ss:$16 sps:$4 sm:$0xff]  }
 0x188   :  { %2490 = vmatpush1.bf16.msra.mxu0 %v4377_v32  ;;  %2702 = vmatpush1.bf16.msra.mxu1 %v4380_v33  ;;  %v4416_v32 = vld [vmem:[#allocation4 + $0x488] ss:$16 sps:$4 sm:$0xff]   ;;  %v4421_v33 = vld [vmem:[#allocation4 + $0x4a4] ss:$16 sps:$4 sm:$0xff]  }
 0x189   :  { %2491 = vmatprep.subr.bf16.mxu0 %v4385_v36  ;;  %2703 = vmatprep.subr.bf16.mxu1 %v4388_v37  ;;  %v4419_v36 = vld [vmem:[#allocation4 + $0x4a0] ss:$16 sps:$4 sm:$0xff]   ;;  %v4422_v37 = vld [vmem:[#allocation4 + $0x4a8] ss:$16 sps:$4 sm:$0xff]  }
 0x18a   :  { %v5034_v26 = vpop.f32.mrb[20].mxu1 }
 0x18b   :  { %v5039_v46 = vpop.f32.mrb[21].mxu1 }
 0x18c   :  { %2492 = vmatpush1.bf16.msra.mxu0 %v4383_v25  ;;  %2704 = vmatpush1.bf16.msra.mxu1 %v4386_v29  ;;  %v5041_v58 = vpop.f32.mrb[22].mxu1  ;;  %v4425_v25 = vld [vmem:[#allocation4 + $0x4c0] ss:$16 sps:$4 sm:$0xff]   ;;  %v4428_v29 = vld [vmem:[#allocation4 + $0x4c8] ss:$16 sps:$4 sm:$0xff]  }
 0x18d   :  { %2514 = vmatprep.subr.bf16.mxu0 %v4391_v48  ;;  %2726 = vmatprep.subr.bf16.mxu1 %v4394_v15  ;;  %v715_v5 = vpack.c.bf16 %v5041_v58, %v5034_v26  ;;  %v5045_v6 = vpop.f32.mrb[23].mxu1  ;;  %v4436_v48 = vld [vmem:[#allocation4 + $0x4ec] ss:$16 sps:$4 sm:$0xff]   ;;  %v4431_v15 = vld [vmem:[#allocation4 + $0x4e0] ss:$16 sps:$4 sm:$0xff]  }
 0x18e   :  { %v716_v0 = vpack.c.bf16 %v5045_v6, %v5039_v46  ;;  %v4587_v6 = vld [vmem:[#allocation6 + $0x14] ss:$8 sps:$4 sm:$0xff]   ;;  %v4588_v26 = vld [vmem:[#allocation6 + $0x20] ss:$8 sps:$4 sm:$0xff]  }
 0x18f   :  { %2494 = vmatmul.mubr.bf16.vlgmr.msra.gmra.mrb[8].mxu0 %v858_v61  ;;  %2706 = vmatmul.mubr.bf16.vlgmr.msra.gmra.mrb[24].mxu1 %v858_v61  ;;  %v4440_v61 = vld [vmem:[#allocation4 + $0x508] ss:$16 sps:$4 sm:$0xff]   ;;  %v4593_v58 = vld [vmem:[#allocation6 + $0x34] ss:$8 sps:$4 sm:$0xff]  }
 0x190   :  { %2515 = vmatpush1.bf16.msra.mxu0 %v4389_v51  ;;  %2727 = vmatpush1.bf16.msra.mxu1 %v4392_v54  ;;  %v4442_v51 = vld [vmem:[#allocation4 + $0x50c] ss:$16 sps:$4 sm:$0xff]   ;;  %v4437_v54 = vld [vmem:[#allocation4 + $0x500] ss:$16 sps:$4 sm:$0xff]  }
 0x191   :  { %2516 = vmatprep.subr.bf16.mxu0 %v4397_v62  ;;  %2728 = vmatprep.subr.bf16.mxu1 %v4400_v1  ;;  %v4445_v62 = vld [vmem:[#allocation4 + $0x524] ss:$16 sps:$4 sm:$0xff]   ;;  %v4448_v1 = vld [vmem:[#allocation4 + $0x52c] ss:$16 sps:$4 sm:$0xff]  }
 0x192   :  { %2503 = vmatprep.mubr.bf16.mxu0 %v867_v43  ;;  %2715 = vmatprep.mubr.bf16.mxu1 %v867_v43  ;;  %v4446_v43 = vld [vmem:[#allocation4 + $0x528] ss:$16 sps:$4 sm:$0xff]  }
 0x194   :  { %2517 = vmatpush1.bf16.msra.mxu0 %v4395_v8  ;;  %2729 = vmatpush1.bf16.msra.mxu1 %v4398_v9  ;;  %v4454_v8 = vld [vmem:[#allocation4 + $0x54c] ss:$16 sps:$4 sm:$0xff]   ;;  %v4449_v9 = vld [vmem:[#allocation4 + $0x540] ss:$16 sps:$4 sm:$0xff]  }
 0x195   :  { %2518 = vmatprep.subr.bf16.mxu0 %v4403_v10  ;;  %2730 = vmatprep.subr.bf16.mxu1 %v4406_v11  ;;  %v4452_v10 = vld [vmem:[#allocation4 + $0x548] ss:$16 sps:$4 sm:$0xff]   ;;  %v4457_v11 = vld [vmem:[#allocation4 + $0x564] ss:$16 sps:$4 sm:$0xff]  }
 0x197   :  { %2504 = vmatmul.mubr.bf16.gmra.mrb[12].mxu0 %v866_v50  ;;  %2716 = vmatmul.mubr.bf16.gmra.mrb[28].mxu1 %v866_v50  ;;  %v4455_v50 = vld [vmem:[#allocation4 + $0x560] ss:$16 sps:$4 sm:$0xff]  }
 0x198   :  { %2519 = vmatpush1.bf16.msra.mxu0 %v4401_v57  ;;  %2731 = vmatpush1.bf16.msra.mxu1 %v4404_v59  ;;  %v4458_v57 = vld [vmem:[#allocation4 + $0x568] ss:$16 sps:$4 sm:$0xff]   ;;  %v4463_v59 = vld [vmem:[#allocation4 + $0x584] ss:$16 sps:$4 sm:$0xff]  }
 0x199   :  { %2520 = vmatprep.subr.bf16.mxu0 %v4409_v16  ;;  %2732 = vmatprep.subr.bf16.mxu1 %v4412_v17  ;;  %v4466_v16 = vld [vmem:[#allocation4 + $0x58c] ss:$16 sps:$4 sm:$0xff]   ;;  %v5055_v17 = vrot.slane %v5002_v14, %v4926_v13  ;;  %v4476_v14 = vld [vmem:[#allocation4 + $0x5c4] ss:$16 sps:$4 sm:$0xff]  }
 0x19a   :  { %2546 = vmatprep.mubr.bf16.mxu0 %v861_v20  ;;  %2758 = vmatprep.mubr.bf16.mxu1 %v861_v20  ;;  %v4461_v20 = vld [vmem:[#allocation4 + $0x580] ss:$16 sps:$4 sm:$0xff]  }
 0x19c   :  { %2521 = vmatpush1.bf16.msra.mxu0 %v4407_v23  ;;  %2733 = vmatpush1.bf16.msra.mxu1 %v4410_v24  ;;  %v4464_v23 = vld [vmem:[#allocation4 + $0x588] ss:$16 sps:$4 sm:$0xff]   ;;  %v797_v24 = vpack.i.b16 %v5055_v17, %v5055_v17 }
 0x19d   :  { %2522 = vmatprep.subr.bf16.mxu0 %v4415_v18  ;;  %2734 = vmatprep.subr.bf16.mxu1 %v4418_v19  ;;  %v4470_v18 = vld [vmem:[#allocation4 + $0x5a4] ss:$16 sps:$4 sm:$0xff]   ;;  %v4473_v19 = vld [vmem:[#allocation4 + $0x5ac] ss:$16 sps:$4 sm:$0xff]  }
 0x1a0   :  { %2523 = vmatpush1.bf16.msra.mxu0 %v4413_v27  ;;  %2735 = vmatpush1.bf16.msra.mxu1 %v4416_v32  ;;  %v4468_v27 = vld [vmem:[#allocation4 + $0x5a0] ss:$16 sps:$4 sm:$0xff]   ;;  %v4471_v32 = vld [vmem:[#allocation4 + $0x5a8] ss:$16 sps:$4 sm:$0xff]  }
 0x1a1   :  { %2524 = vmatprep.subr.bf16.mxu0 %v4421_v33  ;;  %2736 = vmatprep.subr.bf16.mxu1 %v4424_v35  ;;  %v802_v33 = vrot.slane %v797_v24, %v4943_v21  ;;  %v4479_v35 = vld [vmem:[#allocation4 + $0x5cc] ss:$16 sps:$4 sm:$0xff]   ;;  %v4519_v24 = vld [vmem:[#allocation4 + $0x6a8] ss:$16 sps:$4 sm:$0xff]  }
 0x1a3   :  { %v836_v60 = vadd.bf16 %v802_v33, %v713_v2  ;;  %v4500_v2 = vld [vmem:[#allocation4 + $0x644] ss:$16 sps:$4 sm:$0xff]  }
 0x1a4   :  { %2525 = vmatpush1.bf16.msra.mxu0 %v4419_v36  ;;  %2737 = vmatpush1.bf16.msra.mxu1 %v4422_v37  ;;  %v767_v36 = vcombine.high %v5008_v28, %v5008_v28  ;;  %v4474_v37 = vld [vmem:[#allocation4 + $0x5c0] ss:$16 sps:$4 sm:$0xff]  }
 0x1a5   :  { %2526 = vmatprep.subr.bf16.mxu0 %v4427_v42  ;;  %2738 = vmatprep.subr.bf16.mxu1 %v4430_v56  ;;  %v4477_v42 = vld [vmem:[#allocation4 + $0x5c8] ss:$16 sps:$4 sm:$0xff]   ;;  %v828_v56 = vadd.bf16 %v802_v33, %v705_v55  ;;  %v4480_v28 = vld [vmem:[#allocation4 + $0x5e0] ss:$16 sps:$4 sm:$0xff]   ;;  %v4530_v33 = vld [vmem:[#allocation4 + $0x6e4] ss:$16 sps:$4 sm:$0xff]  }
 0x1a8   :  { %2527 = vmatpush1.bf16.msra.mxu0 %v4425_v25  ;;  %2739 = vmatpush1.bf16.msra.mxu1 %v4428_v29  ;;  %v4482_v25 = vld [vmem:[#allocation4 + $0x5e4] ss:$16 sps:$4 sm:$0xff]   ;;  %v4485_v29 = vld [vmem:[#allocation4 + $0x5ec] ss:$16 sps:$4 sm:$0xff]  }
 0x1a9   :  { %2528 = vmatprep.subr.bf16.mxu0 %v4433_v44  ;;  %2740 = vmatprep.subr.bf16.mxu1 %v4436_v48  ;;  %v837_v44 = vadd.bf16 %v5032_v39, %v714_v4  ;;  %v818_v48 = vpack.i.b16 %v767_v36, %v767_v36  ;;  %v4489_v4 = vld [vmem:[#allocation4 + $0x608] ss:$16 sps:$4 sm:$0xff]  }
 0x1aa   :  { %v4531_v36 = vld [vmem:[#allocation4 + $0x6e8] ss:$16 sps:$4 sm:$0xff]  }
 0x1ab   :  { %v853_v53 = vmul.bf16 1045249613, %v837_v44  ;;  %v5070_v55 = vrot.slane %v818_v48, %v4943_v21  ;;  %v4540_v48 = vld [vmem:[#allocation4 + $0x720] ss:$16 sps:$4 sm:$0xff]  }
 0x1ac   :  { %2529 = vmatpush1.bf16.msra.mxu0 %v4431_v15  ;;  %2741 = vmatpush1.bf16.msra.mxu1 %v4434_v49  ;;  %v4483_v15 = vld [vmem:[#allocation4 + $0x5e8] ss:$16 sps:$4 sm:$0xff]   ;;  %v844_v49 = vmul.bf16 1045249613, %v828_v56 }
 0x1ad   :  { %2530 = vmatprep.subr.bf16.mxu0 %v4439_v45  ;;  %2742 = vmatprep.subr.bf16.mxu1 %v4442_v51  ;;  %v4488_v45 = vld [vmem:[#allocation4 + $0x604] ss:$16 sps:$4 sm:$0xff]  }
 0x1ae   :  { %v860_v39 = vmax.bf16 %v844_v49, %v828_v56  ;;  %v4494_v51 = vld [vmem:[#allocation4 + $0x624] ss:$16 sps:$4 sm:$0xff]   ;;  %v4534_v56 = vld [vmem:[#allocation4 + $0x700] ss:$16 sps:$4 sm:$0xff]   ;;  %v4551_v49 = vld [vmem:[#allocation4 + $0x74c] ss:$16 sps:$4 sm:$0xff]  }
 0x1b0   :  { %2531 = vmatpush1.bf16.msra.mxu0 %v4437_v54  ;;  %2743 = vmatpush1.bf16.msra.mxu1 %v4440_v61  ;;  %v4497_v54 = vld [vmem:[#allocation4 + $0x62c] ss:$16 sps:$4 sm:$0xff]   ;;  %v831_v61 = vadd.bf16 %v5070_v55, %v708_v22  ;;  %v4506_v22 = vld [vmem:[#allocation4 + $0x664] ss:$16 sps:$4 sm:$0xff]  }
 0x1b1   :  { %2532 = vmatprep.subr.bf16.mxu0 %v4445_v62  ;;  %2744 = vmatprep.subr.bf16.mxu1 %v4448_v1  ;;  %v869_v62 = vmax.bf16 %v853_v53, %v837_v44  ;;  %v852_v1 = vmul.bf16 1045249613, %v836_v60  ;;  %v4545_v44 = vld [vmem:[#allocation4 + $0x72c] ss:$16 sps:$4 sm:$0xff]   ;;  %v4554_v53 = vld [vmem:[#allocation4 + $0x764] ss:$16 sps:$4 sm:$0xff]  }
 0x1b4   :  { %2533 = vmatpush1.bf16.msra.mxu0 %v4443_v38  ;;  %2745 = vmatpush1.bf16.msra.mxu1 %v4446_v43  ;;  %v4503_v38 = vld [vmem:[#allocation4 + $0x64c] ss:$16 sps:$4 sm:$0xff]   ;;  %v847_v43 = vmul.bf16 1045249613, %v831_v61 }
 0x1b5   :  { %2534 = vmatprep.subr.bf16.mxu0 %v4451_v7  ;;  %2746 = vmatprep.subr.bf16.mxu1 %v4454_v8  ;;  %v868_v7 = vmax.bf16 %v852_v1, %v836_v60  ;;  %v4509_v8 = vld [vmem:[#allocation4 + $0x66c] ss:$16 sps:$4 sm:$0xff]  }
 0x1b6   :  { %v4557_v60 = vld [vmem:[#allocation4 + $0x76c] ss:$16 sps:$4 sm:$0xff]  }
 0x1b8   :  { %2535 = vmatpush1.bf16.msra.mxu0 %v4449_v9  ;;  %2747 = vmatpush1.bf16.msra.mxu1 %v4452_v10  ;;  %v863_v9 = vmax.bf16 %v847_v43, %v831_v61  ;;  %v4504_v10 = vld [vmem:[#allocation4 + $0x660] ss:$16 sps:$4 sm:$0xff]  }
 0x1b9   :  { %2536 = vmatprep.subr.bf16.mxu0 %v4457_v11  ;;  %2748 = vmatprep.subr.bf16.mxu1 %v4460_v12  ;;  %v4507_v11 = vld [vmem:[#allocation4 + $0x668] ss:$16 sps:$4 sm:$0xff]   ;;  %v4512_v12 = vld [vmem:[#allocation4 + $0x684] ss:$16 sps:$4 sm:$0xff]   ;;  %v4558_v61 = vld [vmem:[#allocation4 + $0x780] ss:$16 sps:$4 sm:$0xff]  }
 0x1bc   :  { %2537 = vmatpush1.bf16.msra.mxu0 %v4455_v50  ;;  %2749 = vmatpush1.bf16.msra.mxu1 %v4458_v57  ;;  %v4515_v50 = vld [vmem:[#allocation4 + $0x68c] ss:$16 sps:$4 sm:$0xff]   ;;  %v4510_v57 = vld [vmem:[#allocation4 + $0x680] ss:$16 sps:$4 sm:$0xff]  }
 0x1bd   :  { %2538 = vmatprep.subr.bf16.mxu0 %v4463_v59  ;;  %2750 = vmatprep.subr.bf16.mxu1 %v4466_v16  ;;  %v4513_v59 = vld [vmem:[#allocation4 + $0x688] ss:$16 sps:$4 sm:$0xff]   ;;  %v4518_v16 = vld [vmem:[#allocation4 + $0x6a4] ss:$16 sps:$4 sm:$0xff]  }
 0x1c0   :  { %2539 = vmatpush1.bf16.msra.mxu0 %v4461_v20  ;;  %2751 = vmatpush1.bf16.msra.mxu1 %v4464_v23  ;;  %v4521_v20 = vld [vmem:[#allocation4 + $0x6ac] ss:$16 sps:$4 sm:$0xff]   ;;  %v4516_v23 = vld [vmem:[#allocation4 + $0x6a0] ss:$16 sps:$4 sm:$0xff]  }
 0x1c1   :  { %2540 = vmatprep.subr.bf16.mxu0 %v4470_v18  ;;  %2752 = vmatprep.subr.bf16.mxu1 %v4473_v19  ;;  %v4524_v18 = vld [vmem:[#allocation4 + $0x6c4] ss:$16 sps:$4 sm:$0xff]   ;;  %v4527_v19 = vld [vmem:[#allocation4 + $0x6cc] ss:$16 sps:$4 sm:$0xff]  }
 0x1c4   :  { %2541 = vmatpush1.bf16.msra.mxu0 %v4468_v27  ;;  %2753 = vmatpush1.bf16.msra.mxu1 %v4471_v32  ;;  %v4522_v27 = vld [vmem:[#allocation4 + $0x6c0] ss:$16 sps:$4 sm:$0xff]   ;;  %v4525_v32 = vld [vmem:[#allocation4 + $0x6c8] ss:$16 sps:$4 sm:$0xff]  }
 0x1c5   :  { %2542 = vmatprep.subr.bf16.mxu0 %v4476_v14  ;;  %2754 = vmatprep.subr.bf16.mxu1 %v4479_v35  ;;  %v4533_v14 = vld [vmem:[#allocation4 + $0x6ec] ss:$16 sps:$4 sm:$0xff]   ;;  %v4528_v35 = vld [vmem:[#allocation4 + $0x6e0] ss:$16 sps:$4 sm:$0xff]  }
 0x1c8   :  { %2543 = vmatpush1.bf16.msra.mxu0 %v4474_v37  ;;  %2755 = vmatpush1.bf16.msra.mxu1 %v4477_v42  ;;  %v4536_v37 = vld [vmem:[#allocation4 + $0x704] ss:$16 sps:$4 sm:$0xff]   ;;  %v4539_v42 = vld [vmem:[#allocation4 + $0x70c] ss:$16 sps:$4 sm:$0xff]  }
 0x1c9   :  { %2544 = vmatprep.subr.bf16.mxu0 %v4482_v25  ;;  %2756 = vmatprep.subr.bf16.mxu1 %v4485_v29  ;;  %v4537_v25 = vld [vmem:[#allocation4 + $0x708] ss:$16 sps:$4 sm:$0xff]   ;;  %v4542_v29 = vld [vmem:[#allocation4 + $0x724] ss:$16 sps:$4 sm:$0xff]  }
 0x1cc   :  { %2545 = vmatpush1.bf16.msra.mxu0 %v4480_v28  ;;  %2757 = vmatpush1.bf16.msra.mxu1 %v4483_v15  ;;  %v4543_v28 = vld [vmem:[#allocation4 + $0x728] ss:$16 sps:$4 sm:$0xff]   ;;  %v4548_v15 = vld [vmem:[#allocation4 + $0x744] ss:$16 sps:$4 sm:$0xff]  }
 0x1cd   :  { %2567 = vmatprep.subr.bf16.mxu0 %v4488_v45  ;;  %2779 = vmatprep.subr.bf16.mxu1 %v4491_v47  ;;  %v4546_v45 = vld [vmem:[#allocation4 + $0x740] ss:$16 sps:$4 sm:$0xff]   ;;  %v4549_v47 = vld [vmem:[#allocation4 + $0x748] ss:$16 sps:$4 sm:$0xff]  }
 0x1cf   :  { %2547 = vmatmul.mubr.bf16.vlgmr.msra.gmra.mrb[8].mxu0 %v860_v39  ;;  %2759 = vmatmul.mubr.bf16.vlgmr.msra.gmra.mrb[24].mxu1 %v860_v39  ;;  %v765_v39 = vcombine.high %v5055_v17, %v5055_v17  ;;  %v4572_v17 = vld [vmem:[#allocation4 + $0x7c4] ss:$16 sps:$4 sm:$0xff]  }
 0x1d0   :  { %2568 = vmatpush1.bf16.msra.mxu0 %v4486_v3  ;;  %2780 = vmatpush1.bf16.msra.mxu1 %v4489_v4  ;;  %v4552_v3 = vld [vmem:[#allocation4 + $0x760] ss:$16 sps:$4 sm:$0xff]   ;;  %v4555_v4 = vld [vmem:[#allocation4 + $0x768] ss:$16 sps:$4 sm:$0xff]  }
 0x1d1   :  { %2569 = vmatprep.subr.bf16.mxu0 %v4494_v51  ;;  %2781 = vmatprep.subr.bf16.mxu1 %v4497_v54  ;;  %v4560_v51 = vld [vmem:[#allocation4 + $0x784] ss:$16 sps:$4 sm:$0xff]   ;;  %v4563_v54 = vld [vmem:[#allocation4 + $0x78c] ss:$16 sps:$4 sm:$0xff]   ;;  %v811_v1 = vpack.i.b16 %v765_v39, %v765_v39 }
 0x1d2   :  { %2556 = vmatprep.mubr.bf16.mxu0 %v869_v62  ;;  %2768 = vmatprep.mubr.bf16.mxu1 %v869_v62  ;;  %v4561_v62 = vld [vmem:[#allocation4 + $0x788] ss:$16 sps:$4 sm:$0xff]   ;;  %v4679_v39 = vld [vmem:[#allocation7] sm:$0xff]  }
 0x1d3   :  { %v816_v43 = vrot.slane %v811_v1, %v4943_v21  ;;  %v4684_v1 = vld [vmem:[#allocation7 + $0x58] sm:$0xff]  }
 0x1d4   :  { %2570 = vmatpush1.bf16.msra.mxu0 %v4492_v52  ;;  %2782 = vmatpush1.bf16.msra.mxu1 %v4495_v63  ;;  %v4566_v52 = vld [vmem:[#allocation4 + $0x7a4] ss:$16 sps:$4 sm:$0xff]   ;;  %v4569_v63 = vld [vmem:[#allocation4 + $0x7ac] ss:$16 sps:$4 sm:$0xff]  }
 0x1d5   :  { %2571 = vmatprep.subr.bf16.mxu0 %v4500_v2  ;;  %2783 = vmatprep.subr.bf16.mxu1 %v4503_v38  ;;  %v4564_v2 = vld [vmem:[#allocation4 + $0x7a0] ss:$16 sps:$4 sm:$0xff]   ;;  %v4567_v38 = vld [vmem:[#allocation4 + $0x7a8] ss:$16 sps:$4 sm:$0xff]   ;;  %v838_v46 = vadd.bf16 %v816_v43, %v715_v5 }
 0x1d6   :  { %v4591_v5 = vld [vmem:[#allocation6 + $0x30] ss:$8 sps:$4 sm:$0xff]  }
 0x1d7   :  { %2557 = vmatmul.mubr.bf16.gmra.mrb[12].mxu0 %v868_v7  ;;  %2769 = vmatmul.mubr.bf16.gmra.mrb[28].mxu1 %v868_v7  ;;  %v4575_v7 = vld [vmem:[#allocation4 + $0x7cc] ss:$16 sps:$4 sm:$0xff]  }
 0x1d8   :  { %2572 = vmatpush1.bf16.msra.mxu0 %v4498_v31  ;;  %2784 = vmatpush1.bf16.msra.mxu1 %v4501_v41  ;;  %v4570_v31 = vld [vmem:[#allocation4 + $0x7c0] ss:$16 sps:$4 sm:$0xff]   ;;  %v4573_v41 = vld [vmem:[#allocation4 + $0x7c8] ss:$16 sps:$4 sm:$0xff]  }
 0x1d9   :  { %2573 = vmatprep.subr.bf16.mxu0 %v4506_v22  ;;  %2785 = vmatprep.subr.bf16.mxu1 %v4509_v8  ;;  %v839_v22 = vadd.bf16 %v5070_v55, %v716_v0  ;;  %v830_v8 = vadd.bf16 %v816_v43, %v707_v40  ;;  %v4582_v40 = vld [vmem:[#allocation6] ss:$8 sps:$4 sm:$0xff]   ;;  %v854_v0 = vmul.bf16 1045249613, %v838_v46  ;;  %v4585_v55 = vld [vmem:[#allocation6 + $0x10] ss:$8 sps:$4 sm:$0xff]  }
 0x1da   :  { %2599 = vmatprep.mubr.bf16.mxu0 %v863_v9  ;;  %2811 = vmatprep.mubr.bf16.mxu1 %v863_v9  ;;  %v4578_v9 = vld [vmem:[#allocation4 + $0x7e4] ss:$16 sps:$4 sm:$0xff]  }
 0x1dc   :  { %2574 = vmatpush1.bf16.msra.mxu0 %v4504_v10  ;;  %2786 = vmatpush1.bf16.msra.mxu1 %v4507_v11  ;;  %v4581_v10 = vld [vmem:[#allocation4 + $0x7ec] ss:$16 sps:$4 sm:$0xff]   ;;  %v4576_v11 = vld [vmem:[#allocation4 + $0x7e0] ss:$16 sps:$4 sm:$0xff]  }
 0x1dd   :  { %2575 = vmatprep.subr.bf16.mxu0 %v4512_v12  ;;  %2787 = vmatprep.subr.bf16.mxu1 %v4515_v50  ;;  %v4579_v12 = vld [vmem:[#allocation4 + $0x7e8] ss:$16 sps:$4 sm:$0xff]   ;;  %v855_v50 = vmul.bf16 1045249613, %v839_v22 }
 0x1df   :  { %v871_v30 = vmax.bf16 %v855_v50, %v839_v22 }
 0x1e0   :  { %2576 = vmatpush1.bf16.msra.mxu0 %v4510_v57  ;;  %2788 = vmatpush1.bf16.msra.mxu1 %v4513_v59  ;;  %v846_v57 = vmul.bf16 1045249613, %v830_v8  ;;  %v4584_v59 = vld [vmem:[#allocation6 + $0x4] ss:$8 sps:$4 sm:$0xff]  }
 0x1e1   :  { %2577 = vmatprep.subr.bf16.mxu0 %v4518_v16  ;;  %2789 = vmatprep.subr.bf16.mxu1 %v4521_v20  ;;  %v4590_v16 = vld [vmem:[#allocation6 + $0x24] ss:$8 sps:$4 sm:$0xff]   ;;  %v870_v20 = vmax.bf16 %v854_v0, %v838_v46 }
 0x1e2   :  { %v862_v34 = vmax.bf16 %v846_v57, %v830_v8 }
 0x1e4   :  { %2578 = vmatpush1.bf16.msra.mxu0 %v4516_v23  ;;  %2790 = vmatpush1.bf16.msra.mxu1 %v4519_v24  ;;  %v4596_v23 = vld [vmem:[#allocation6 + $0x44] ss:$8 sps:$4 sm:$0xff]   ;;  %v4594_v24 = vld [vmem:[#allocation6 + $0x40] ss:$8 sps:$4 sm:$0xff]  }
 0x1e5   :  { %2579 = vmatprep.subr.bf16.mxu0 %v4524_v18  ;;  %2791 = vmatprep.subr.bf16.mxu1 %v4527_v19  ;;  %v4599_v18 = vld [vmem:[#allocation6 + $0x54] ss:$8 sps:$4 sm:$0xff]   ;;  %v4597_v19 = vld [vmem:[#allocation6 + $0x50] ss:$8 sps:$4 sm:$0xff]  }
 0x1e8   :  { %2580 = vmatpush1.bf16.msra.mxu0 %v4522_v27  ;;  %2792 = vmatpush1.bf16.msra.mxu1 %v4525_v32  ;;  %v4602_v27 = vld [vmem:[#allocation6 + $0x64] ss:$8 sps:$4 sm:$0xff]   ;;  %v4600_v32 = vld [vmem:[#allocation6 + $0x60] ss:$8 sps:$4 sm:$0xff]  }
 0x1e9   :  { %2581 = vmatprep.subr.bf16.mxu0 %v4530_v33  ;;  %2793 = vmatprep.subr.bf16.mxu1 %v4533_v14  ;;  %v4605_v33 = vld [vmem:[#allocation6 + $0x74] ss:$8 sps:$4 sm:$0xff]   ;;  %v4603_v14 = vld [vmem:[#allocation6 + $0x70] ss:$8 sps:$4 sm:$0xff]  }
 0x1ec   :  { %2582 = vmatpush1.bf16.msra.mxu0 %v4528_v35  ;;  %2794 = vmatpush1.bf16.msra.mxu1 %v4531_v36  ;;  %v4608_v35 = vld [vmem:[#allocation6 + $0x84] ss:$8 sps:$4 sm:$0xff]   ;;  %v4606_v36 = vld [vmem:[#allocation6 + $0x80] ss:$8 sps:$4 sm:$0xff]  }
 0x1ed   :  { %2583 = vmatprep.subr.bf16.mxu0 %v4536_v37  ;;  %2795 = vmatprep.subr.bf16.mxu1 %v4539_v42  ;;  %v4611_v37 = vld [vmem:[#allocation6 + $0x94] ss:$8 sps:$4 sm:$0xff]   ;;  %v4609_v42 = vld [vmem:[#allocation6 + $0x90] ss:$8 sps:$4 sm:$0xff]  }
 0x1f0   :  { %2584 = vmatpush1.bf16.msra.mxu0 %v4534_v56  ;;  %2796 = vmatpush1.bf16.msra.mxu1 %v4537_v25  ;;  %v4614_v56 = vld [vmem:[#allocation6 + $0xa4] ss:$8 sps:$4 sm:$0xff]   ;;  %v4612_v25 = vld [vmem:[#allocation6 + $0xa0] ss:$8 sps:$4 sm:$0xff]  }
 0x1f1   :  { %2585 = vmatprep.subr.bf16.mxu0 %v4542_v29  ;;  %2797 = vmatprep.subr.bf16.mxu1 %v4545_v44  ;;  %v4617_v29 = vld [vmem:[#allocation6 + $0xb4] ss:$8 sps:$4 sm:$0xff]   ;;  %v4615_v44 = vld [vmem:[#allocation6 + $0xb0] ss:$8 sps:$4 sm:$0xff]  }
 0x1f4   :  { %2586 = vmatpush1.bf16.msra.mxu0 %v4540_v48  ;;  %2798 = vmatpush1.bf16.msra.mxu1 %v4543_v28  ;;  %v4620_v48 = vld [vmem:[#allocation6 + $0xc4] ss:$8 sps:$4 sm:$0xff]   ;;  %v4618_v28 = vld [vmem:[#allocation6 + $0xc0] ss:$8 sps:$4 sm:$0xff]  }
 0x1f5   :  { %2587 = vmatprep.subr.bf16.mxu0 %v4548_v15  ;;  %2799 = vmatprep.subr.bf16.mxu1 %v4551_v49  ;;  %v4623_v15 = vld [vmem:[#allocation6 + $0xd4] ss:$8 sps:$4 sm:$0xff]   ;;  %v4621_v49 = vld [vmem:[#allocation6 + $0xd0] ss:$8 sps:$4 sm:$0xff]  }
 0x1f8   :  { %2588 = vmatpush1.bf16.msra.mxu0 %v4546_v45  ;;  %2800 = vmatpush1.bf16.msra.mxu1 %v4549_v47  ;;  %v4626_v45 = vld [vmem:[#allocation6 + $0xe4] ss:$8 sps:$4 sm:$0xff]   ;;  %v4624_v47 = vld [vmem:[#allocation6 + $0xe0] ss:$8 sps:$4 sm:$0xff]  }
 0x1f9   :  { %2589 = vmatprep.subr.bf16.mxu0 %v4554_v53  ;;  %2801 = vmatprep.subr.bf16.mxu1 %v4557_v60  ;;  %v4629_v53 = vld [vmem:[#allocation6 + $0xf4] ss:$8 sps:$4 sm:$0xff]   ;;  %v4627_v60 = vld [vmem:[#allocation6 + $0xf0] ss:$8 sps:$4 sm:$0xff]  }
 0x1fc   :  { %2590 = vmatpush1.bf16.msra.mxu0 %v4552_v3  ;;  %2802 = vmatpush1.bf16.msra.mxu1 %v4555_v4  ;;  %v4632_v3 = vld [vmem:[#allocation6 + $0x104] ss:$8 sps:$4 sm:$0xff]  }
 0x1fd   :  { %2591 = vmatprep.subr.bf16.mxu0 %v4560_v51  ;;  %2803 = vmatprep.subr.bf16.mxu1 %v4563_v54  ;;  %v4678_v4 = vld [vmem:[#allocation7 + $0x40] sm:$0xff]   ;;  %v4680_v51 = vld [vmem:[#allocation7 + $0x48] sm:$0xff]  }
 0x1fe   :  { %v4681_v54 = vld [vmem:[#allocation7 + $0x8] sm:$0xff]  }
 0x200   :  { %2592 = vmatpush1.bf16.msra.mxu0 %v4558_v61  ;;  %2804 = vmatpush1.bf16.msra.mxu1 %v4561_v62  ;;  %v4682_v61 = vld [vmem:[#allocation7 + $0x50] sm:$0xff]  }
 0x201   :  { %2593 = vmatprep.subr.bf16.mxu0 %v4566_v52  ;;  %2805 = vmatprep.subr.bf16.mxu1 %v4569_v63  ;;  %v4683_v62 = vld [vmem:[#allocation7 + $0x10] sm:$0xff]   ;;  %v4685_v52 = vld [vmem:[#allocation7 + $0x18] sm:$0xff]   ;;  %v4686_v63 = vld [vmem:[#allocation7 + $0x60] sm:$0xff]  }
 0x204   :  { %2594 = vmatpush1.bf16.msra.mxu0 %v4564_v2  ;;  %2806 = vmatpush1.bf16.msra.mxu1 %v4567_v38  ;;  %v4687_v2 = vld [vmem:[#allocation7 + $0x20] sm:$0xff]  }
 0x205   :  { %2595 = vmatprep.subr.bf16.mxu0 %v4572_v17  ;;  %2807 = vmatprep.subr.bf16.mxu1 %v4575_v7  ;;  %v3995_v38 = vld.sshfl [vmem:[%s5158_s4] sm:$0x33 pattern:$0x75316420] }
 0x206   :  { %v2849_v43 = vcombine.high %v3995_v38, %v3995_v38  ;;  %v5096_v17 = vrot.slane %v3995_v38, %v4926_v13  ;;  %v4648_v38 = vld [vmem:[#allocation6 + $0x160] ss:$8 sps:$4 sm:$0xff]  }
 0x208   :  { %2596 = vmatpush1.bf16.msra.mxu0 %v4570_v31  ;;  %2808 = vmatpush1.bf16.msra.mxu1 %v4573_v41  ;;  %v2863_v7 = vrot.slane %v2849_v43, %v4926_v13  ;;  %v2867_v31 = vpack.i.b16 %v5096_v17, %v5096_v17  ;;  %v4653_v43 = vld [vmem:[#allocation6 + $0x174] ss:$8 sps:$4 sm:$0xff]  }
 0x209   :  { %2597 = vmatprep.subr.bf16.mxu0 %v4578_v9  ;;  %2809 = vmatprep.subr.bf16.mxu1 %v4581_v10 }
 0x20a   :  { %v2874_v41 = vpack.i.b16 %v2863_v7, %v2863_v7  ;;  %v2865_v9 = vcombine.high %v2863_v7, %v2863_v7  ;;  %v4651_v7 = vld [vmem:[#allocation6 + $0x170] ss:$8 sps:$4 sm:$0xff]  }
 0x20c   :  { %2598 = vmatpush1.bf16.msra.mxu0 %v4576_v11  ;;  %2810 = vmatpush1.bf16.msra.mxu1 %v4579_v12  ;;  %v2872_v12 = vrot.slane %v2867_v31, %v4943_v21  ;;  %v4656_v31 = vld [vmem:[#allocation6 + $0x184] ss:$8 sps:$4 sm:$0xff]  }
 0x20d   :  { %3302 = vmatprep.subr.bf16.mxu0 %v4584_v59  ;;  %4097 = vmatprep.subr.bf16.mxu1 %v4678_v4  ;;  %v2879_v59 = vrot.slane %v2874_v41, %v4943_v21  ;;  %v4636_v4 = vld [vmem:[#allocation6 + $0x120] ss:$8 sps:$4 sm:$0xff]  }
 0x20e   :  { %v4654_v41 = vld [vmem:[#allocation6 + $0x180] ss:$8 sps:$4 sm:$0xff]  }
 0x20f   :  { %2600 = vmatmul.mubr.bf16.vlgmr.msra.gmra.mrb[8].mxu0 %v862_v34  ;;  %2812 = vmatmul.mubr.bf16.vlgmr.msra.gmra.mrb[24].mxu1 %v862_v34 }
 0x210   :  { %2609 = vmatprep.mubr.bf16.mxu0 %v871_v30  ;;  %2821 = vmatprep.mubr.bf16.mxu1 %v871_v30 }
 0x211   :  { %3303 = vmatpush1.bf16.msra.mxu0 %v4582_v40  ;;  %4098 = vmatpush3.bf16.msra.mxu1 %v4679_v39 }
 0x212   :  { %3304 = vmatprep.subr.bf16.mxu0 %v4587_v6  ;;  %4099 = vmatprep.subr.bf16.mxu1 %v4680_v51  ;;  %v4641_v51 = vld [vmem:[#allocation6 + $0x134] ss:$8 sps:$4 sm:$0xff]  }
 0x215   :  { %3305 = vmatpush1.bf16.msra.mxu0 %v4585_v55  ;;  %4100 = vmatpush3.bf16.msra.mxu1 %v4681_v54  ;;  %v2888_v55 = vpack.i.b16 %v2865_v9, %v2865_v9  ;;  %v4657_v9 = vld [vmem:[#allocation6 + $0x190] ss:$8 sps:$4 sm:$0xff]  }
 0x216   :  { %3306 = vmatprep.subr.bf16.mxu0 %v4590_v16  ;;  %4101 = vmatprep.subr.bf16.mxu1 %v4682_v61  ;;  %v4639_v61 = vld [vmem:[#allocation6 + $0x130] ss:$8 sps:$4 sm:$0xff]  }
 0x217   :  { %2610 = vmatmul.mubr.bf16.gmra.mrb[12].mxu0 %v870_v20  ;;  %2822 = vmatmul.mubr.bf16.gmra.mrb[28].mxu1 %v870_v20 }
 0x219   :  { %3307 = vmatpush1.bf16.msra.mxu0 %v4588_v26  ;;  %4102 = vmatpush3.bf16.msra.mxu1 %v4683_v62  ;;  %v4644_v62 = vld [vmem:[#allocation6 + $0x144] ss:$8 sps:$4 sm:$0xff]  }
 0x21a   :  { %3308 = vmatprep.subr.bf16.mxu0 %v4593_v58  ;;  %4103 = vmatprep.subr.bf16.mxu1 %v4684_v1  ;;  %v4642_v1 = vld [vmem:[#allocation6 + $0x140] ss:$8 sps:$4 sm:$0xff]  }
 0x21d   :  { %3309 = vmatpush1.bf16.msra.mxu0 %v4591_v5  ;;  %4104 = vmatpush3.bf16.msra.mxu1 %v4685_v52  ;;  %v5110_v5 = vrot.slane %v2888_v55, %v4943_v21  ;;  %v4647_v52 = vld [vmem:[#allocation6 + $0x154] ss:$8 sps:$4 sm:$0xff]  }
 0x21e   :  { %3310 = vmatprep.subr.bf16.mxu0 %v4596_v23  ;;  %4105 = vmatprep.subr.bf16.mxu1 %v4686_v63  ;;  %v4645_v63 = vld [vmem:[#allocation6 + $0x150] ss:$8 sps:$4 sm:$0xff]  }
 0x221   :  { %3311 = vmatpush1.bf16.msra.mxu0 %v4594_v24  ;;  %4106 = vmatpush3.bf16.msra.mxu1 %v4687_v2  ;;  %v4650_v2 = vld [vmem:[#allocation6 + $0x164] ss:$8 sps:$4 sm:$0xff]  }
 0x222   :  { %3312 = vmatprep.subr.bf16.mxu0 %v4599_v18 }
 0x225   :  { %3313 = vmatpush1.bf16.msra.mxu0 %v4597_v19 }
 0x226   :  { %3314 = vmatprep.subr.bf16.mxu0 %v4602_v27 }
 0x229   :  { %3315 = vmatpush1.bf16.msra.mxu0 %v4600_v32 }
 0x22a   :  { %3316 = vmatprep.subr.bf16.mxu0 %v4605_v33 }
 0x22d   :  { %3317 = vmatpush1.bf16.msra.mxu0 %v4603_v14  ;;  %v4630_v14 = vld [vmem:[#allocation6 + $0x100] ss:$8 sps:$4 sm:$0xff]  }
 0x22e   :  { %3318 = vmatprep.subr.bf16.mxu0 %v4608_v35 }
 0x231   :  { %3319 = vmatpush1.bf16.msra.mxu0 %v4606_v36 }
 0x232   :  { %3320 = vmatprep.subr.bf16.mxu0 %v4611_v37 }
 0x235   :  { %3321 = vmatpush1.bf16.msra.mxu0 %v4609_v42 }
 0x236   :  { %3322 = vmatprep.subr.bf16.mxu0 %v4614_v56 }
 0x239   :  { %3323 = vmatpush1.bf16.msra.mxu0 %v4612_v25  ;;  %v4635_v25 = vld [vmem:[#allocation6 + $0x114] ss:$8 sps:$4 sm:$0xff]  }
 0x23a   :  { %3324 = vmatprep.subr.bf16.mxu0 %v4617_v29 }
 0x23d   :  { %3325 = vmatpush1.bf16.msra.mxu0 %v4615_v44 }
 0x23e   :  { %3326 = vmatprep.subr.bf16.mxu0 %v4620_v48 }
 0x241   :  { %3327 = vmatpush1.bf16.msra.mxu0 %v4618_v28 }
 0x242   :  { %3328 = vmatprep.subr.bf16.mxu0 %v4623_v15 }
 0x245   :  { %3329 = vmatpush1.bf16.msra.mxu0 %v4621_v49  ;;  %v4633_v49 = vld [vmem:[#allocation6 + $0x110] ss:$8 sps:$4 sm:$0xff]  }
 0x246   :  { %3330 = vmatprep.subr.bf16.mxu0 %v4626_v45 }
 0x249   :  { %3331 = vmatpush1.bf16.msra.mxu0 %v4624_v47  ;;  %v4638_v47 = vld [vmem:[#allocation6 + $0x124] ss:$8 sps:$4 sm:$0xff]  }
 0x24a   :  { %3332 = vmatprep.subr.bf16.mxu0 %v4629_v53 }
 0x24d   :  { %3333 = vmatpush1.bf16.msra.mxu0 %v4627_v60 }
 0x24e   :  { %3355 = vmatprep.subr.bf16.mxu0 %v4632_v3 }
 0x2e2   :  { %v2601_v22 = vpop.f32.mrb[8].mxu0  ;;  %v5101_v8 = vpop.f32.mrb[24].mxu1 }
 0x2e3   :  { %v2603_v10 = vpop.f32.mrb[9].mxu0  ;;  %v2815_v11 = vpop.f32.mrb[25].mxu1 }
 0x2e4   :  { %v2605_v50 = vpop.f32.mrb[10].mxu0  ;;  %v5104_v57 = vpop.f32.mrb[26].mxu1 }
 0x2e5   :  { %v2832_v46 = vpack.c.bf16 %v2605_v50, %v2601_v22  ;;  %v2834_v30 = vpack.c.bf16 %v5104_v57, %v5101_v8  ;;  %v2607_v34 = vpop.f32.mrb[11].mxu0  ;;  %v2819_v40 = vpop.f32.mrb[27].mxu1  ;;  %v4659_v22 = vld [vmem:[#allocation6 + $0x194] ss:$8 sps:$4 sm:$0xff]   ;;  %v4663_v50 = vld [vmem:[#allocation6 + $0x1b0] ss:$8 sps:$4 sm:$0xff]  }
 0x2e6   :  { %v2833_v6 = vpack.c.bf16 %v2607_v34, %v2603_v10  ;;  %v2835_v0 = vpack.c.bf16 %v2819_v40, %v2815_v11  ;;  %v4662_v10 = vld [vmem:[#allocation6 + $0x1a4] ss:$8 sps:$4 sm:$0xff]   ;;  %v4660_v11 = vld [vmem:[#allocation6 + $0x1a0] ss:$8 sps:$4 sm:$0xff]  }
 0x2e7   :  { %v2894_v16 = vadd.bf16 %v2872_v12, %v2832_v46  ;;  %v4668_v46 = vld [vmem:[#allocation6 + $0x1c4] ss:$8 sps:$4 sm:$0xff]   ;;  %v4666_v34 = vld [vmem:[#allocation6 + $0x1c0] ss:$8 sps:$4 sm:$0xff]  }
 0x2e8   :  { %v2895_v20 = vadd.bf16 %v2879_v59, %v2833_v6  ;;  %v2897_v29 = vadd.bf16 %v5110_v5, %v2835_v0  ;;  %v4671_v6 = vld [vmem:[#allocation6 + $0x1d4] ss:$8 sps:$4 sm:$0xff]   ;;  %v4669_v0 = vld [vmem:[#allocation6 + $0x1d0] ss:$8 sps:$4 sm:$0xff]  }
 0x2e9   :  { %v2902_v26 = vmul.bf16 1045249613, %v2894_v16 }
 0x2ea   :  { %v2903_v58 = vmul.bf16 1045249613, %v2895_v20  ;;  %v2611_v23 = vpop.f32.mrb[12].mxu0  ;;  %v5112_v24 = vpop.f32.mrb[28].mxu1  ;;  %v2905_v53 = vmul.bf16 1045249613, %v2897_v29 }
 0x2eb   :  { %v2613_v18 = vpop.f32.mrb[13].mxu0  ;;  %v5114_v19 = vpop.f32.mrb[29].mxu1  ;;  %v2910_v35 = vmax.bf16 %v2902_v26, %v2894_v16  ;;  %v4674_v16 = vld [vmem:[#allocation6 + $0x1e4] ss:$8 sps:$4 sm:$0xff]  }
 0x2ec   :  { %v2615_v27 = vpop.f32.mrb[14].mxu0  ;;  %v5116_v32 = vpop.f32.mrb[30].mxu1  ;;  %v2911_v33 = vmax.bf16 %v2903_v58, %v2895_v20  ;;  %v2913_v54 = vmax.bf16 %v2905_v53, %v2897_v29  ;;  %v4672_v20 = vld [vmem:[#allocation6 + $0x1e0] ss:$8 sps:$4 sm:$0xff]  }
 0x2ed   :  { %v2836_v36 = vpack.c.bf16 %v2615_v27, %v2611_v23  ;;  %v2838_v37 = vpack.c.bf16 %v5116_v32, %v5112_v24  ;;  %v2617_v42 = vpop.f32.mrb[15].mxu0  ;;  %v5120_v56 = vpop.f32.mrb[31].mxu1  ;;  %v4675_v23 = vld [vmem:[#allocation6 + $0x1f0] ss:$8 sps:$4 sm:$0xff]  }
 0x2ee   :  { %v2837_v44 = vpack.c.bf16 %v2617_v42, %v2613_v18  ;;  %v2839_v48 = vpack.c.bf16 %v5120_v56, %v5114_v19  ;;  %3334 = vmatprep.mubr.bf16.mxu0 %v2911_v33  ;;  %v4688_v19 = vld [vmem:[#allocation7 + $0x68] sm:$0xff]   ;;  %v4692_v42 = vld [vmem:[#allocation7 + $0x78] sm:$0xff]   ;;  %v4060_v24 = vld.sshfl [vmem:[%s5160_s6] sm:$0x11 pattern:$0x75316420] }
 0x2ef   :  { %v2898_v28 = vadd.bf16 %v2872_v12, %v2836_v36  ;;  %3335 = vmatmul.mubr.bf16.vlgmr.msra.gmra.mrb[16].mxu0 %v2910_v35  ;;  %v4665_v12 = vld [vmem:[#allocation6 + $0x1b4] ss:$8 sps:$4 sm:$0xff]   ;;  %v4689_v35 = vld [vmem:[#allocation7 + $0x28] sm:$0xff]   ;;  %4107 = vmatprep.subr.bf16.mxu1 %v4688_v19  ;;  %v3421_v32 = vcombine.high %v4060_v24, %v4060_v24 }
 0x2f0   :  { %v2899_v15 = vadd.bf16 %v2879_v59, %v2837_v44  ;;  %3356 = vmatpush1.bf16.msra.mxu0 %v4630_v14  ;;  %v2864_v59 = vcombine.high %v5096_v17, %v5096_v17  ;;  %v4677_v17 = vld [vmem:[#allocation6 + $0x1f4] ss:$8 sps:$4 sm:$0xff]   ;;  %v2901_v58 = vadd.bf16 %v5110_v5, %v2839_v48  ;;  %4108 = vmatpush3.bf16.msra.mxu1 %v4689_v35 }
 0x2f1   :  { %v2906_v45 = vmul.bf16 1045249613, %v2898_v28  ;;  %3357 = vmatprep.subr.bf16.mxu0 %v4635_v25  ;;  %v4690_v5 = vld [vmem:[#allocation7 + $0x70] sm:$0xff]   ;;  %v4693_v56 = vld [vmem:[#allocation7 + $0x38] sm:$0xff]   ;;  %v3435_v25 = vrot.slane %v3421_v32, %v4926_v13 }
 0x2f2   :  { %v2907_v60 = vmul.bf16 1045249613, %v2899_v15  ;;  %v2881_v40 = vpack.i.b16 %v2864_v59, %v2864_v59  ;;  %v2909_v27 = vmul.bf16 1045249613, %v2901_v58  ;;  %v4691_v36 = vld [vmem:[#allocation7 + $0x30] sm:$0xff]   ;;  %4109 = vmatprep.subr.bf16.mxu1 %v4690_v5 }
 0x2f3   :  { %v2914_v39 = vmax.bf16 %v2906_v45, %v2898_v28  ;;  %v3444_v44 = vpack.i.b16 %v3435_v25, %v3435_v25 }
 0x2f4   :  { %3358 = vmatpush1.bf16.msra.mxu0 %v4633_v49  ;;  %v2915_v3 = vmax.bf16 %v2907_v60, %v2899_v15  ;;  %v2886_v55 = vrot.slane %v2881_v40, %v4943_v21  ;;  %v2917_v8 = vmax.bf16 %v2909_v27, %v2901_v58  ;;  %4110 = vmatpush3.bf16.msra.mxu1 %v4691_v36 }
 0x2f5   :  { %3359 = vmatprep.subr.bf16.mxu0 %v4638_v47  ;;  %4111 = vmatprep.subr.bf16.mxu1 %v4692_v42  ;;  %v3449_v45 = vrot.slane %v3444_v44, %v4943_v21 }
 0x2f6   :  { %3344 = vmatprep.mubr.bf16.mxu0 %v2915_v3  ;;  %v2896_v26 = vadd.bf16 %v2886_v55, %v2834_v30  ;;  %v2900_v14 = vadd.bf16 %v2886_v55, %v2838_v37  ;;  %v3428_v37 = vrot.slane %v4060_v24, %v4926_v13 }
 0x2f7   :  { %3345 = vmatmul.mubr.bf16.gmra.mrb[20].mxu0 %v2914_v39 }
 0x2f8   :  { %3360 = vmatpush1.bf16.msra.mxu0 %v4636_v4  ;;  %3387 = vmatprep.mubr.bf16.mxu0 %v2913_v54  ;;  %v2904_v18 = vmul.bf16 1045249613, %v2896_v26  ;;  %v2908_v57 = vmul.bf16 1045249613, %v2900_v14  ;;  %v3437_v29 = vpack.i.b16 %v3428_v37, %v3428_v37 }
 0x2f9   :  { %3361 = vmatprep.subr.bf16.mxu0 %v4641_v51  ;;  %4112 = vmatpush3.bf16.msra.mxu1 %v4693_v56 }
 0x2fa   :  { %v2912_v33 = vmax.bf16 %v2904_v18, %v2896_v26  ;;  %v2916_v30 = vmax.bf16 %v2908_v57, %v2900_v14  ;;  %v3442_v15 = vrot.slane %v3437_v29, %v4943_v21 }
 0x2fc   :  { %3362 = vmatpush1.bf16.msra.mxu0 %v4639_v61 }
 0x2fd   :  { %3363 = vmatprep.subr.bf16.mxu0 %v4644_v62 }
 0x300   :  { %3364 = vmatpush1.bf16.msra.mxu0 %v4642_v1 }
 0x301   :  { %3365 = vmatprep.subr.bf16.mxu0 %v4647_v52 }
 0x304   :  { %3366 = vmatpush1.bf16.msra.mxu0 %v4645_v63 }
 0x305   :  { %3367 = vmatprep.subr.bf16.mxu0 %v4650_v2 }
 0x308   :  { %3368 = vmatpush1.bf16.msra.mxu0 %v4648_v38 }
 0x309   :  { %3369 = vmatprep.subr.bf16.mxu0 %v4653_v43 }
 0x30c   :  { %3370 = vmatpush1.bf16.msra.mxu0 %v4651_v7 }
 0x30d   :  { %3371 = vmatprep.subr.bf16.mxu0 %v4656_v31 }
 0x310   :  { %3372 = vmatpush1.bf16.msra.mxu0 %v4654_v41 }
 0x311   :  { %3373 = vmatprep.subr.bf16.mxu0 %v4659_v22 }
 0x314   :  { %3374 = vmatpush1.bf16.msra.mxu0 %v4657_v9 }
 0x315   :  { %3375 = vmatprep.subr.bf16.mxu0 %v4662_v10 }
 0x318   :  { %3376 = vmatpush1.bf16.msra.mxu0 %v4660_v11 }
 0x319   :  { %3377 = vmatprep.subr.bf16.mxu0 %v4665_v12  ;;  %v4061_v12 = vld [vmem:[%s5162_s8] ss:$0 sm:$0xff] }
 0x31c   :  { %3378 = vmatpush1.bf16.msra.mxu0 %v4663_v50 }
 0x31d   :  { %3379 = vmatprep.subr.bf16.mxu0 %v4668_v46 }
 0x320   :  { %3380 = vmatpush1.bf16.msra.mxu0 %v4666_v34 }
 0x321   :  { %3381 = vmatprep.subr.bf16.mxu0 %v4671_v6 }
 0x324   :  { %3382 = vmatpush1.bf16.msra.mxu0 %v4669_v0 }
 0x325   :  { %3383 = vmatprep.subr.bf16.mxu0 %v4674_v16 }
 0x328   :  { %3384 = vmatpush1.bf16.msra.mxu0 %v4672_v20 }
 0x329   :  { %3385 = vmatprep.subr.bf16.mxu0 %v4677_v17 }
 0x32c   :  { %3386 = vmatpush1.bf16.msra.mxu0 %v4675_v23 }
 0x32f   :  { %3388 = vmatmul.mubr.bf16.vlgmr.msra.gmra.mrb[16].mxu0 %v2912_v33 }
 0x330   :  { %3397 = vmatprep.mubr.bf16.mxu0 %v2917_v8 }
 0x337   :  { %3398 = vmatmul.mubr.bf16.gmra.mrb[20].mxu0 %v2916_v30 }
 0x402   :  { %v3389_v48 = vpop.f32.mrb[16].mxu0 }
 0x403   :  { %v3391_v28 = vpop.f32.mrb[17].mxu0 }
 0x404   :  { %v3393_v49 = vpop.f32.mrb[18].mxu0 }
 0x405   :  { %v3408_v47 = vpack.c.bf16 %v3393_v49, %v3389_v48  ;;  %v3395_v53 = vpop.f32.mrb[19].mxu0 }
 0x406   :  { %v3409_v60 = vpack.c.bf16 %v3395_v53, %v3391_v28 }
 0x407   :  { %v3450_v3 = vadd.bf16 %v3442_v15, %v3408_v47 }
 0x408   :  { %v3451_v4 = vadd.bf16 %v3449_v45, %v3409_v60 }
 0x409   :  { %v3454_v39 = vmul.bf16 1045249613, %v3450_v3 }
 0x40a   :  { %v3455_v51 = vmul.bf16 1045249613, %v3451_v4  ;;  %v3399_v54 = vpop.f32.mrb[20].mxu0 }
 0x40b   :  { %v3401_v61 = vpop.f32.mrb[21].mxu0  ;;  %v3458_v1 = vmax.bf16 %v3454_v39, %v3450_v3 }
 0x40c   :  { %v3403_v62 = vpop.f32.mrb[22].mxu0  ;;  %v3459_v13 = vmax.bf16 %v3455_v51, %v3451_v4 }
 0x40d   :  { %v3410_v52 = vpack.c.bf16 %v3403_v62, %v3399_v54  ;;  %v3405_v63 = vpop.f32.mrb[23].mxu0 }
 0x40e   :  { %v3411_v2 = vpack.c.bf16 %v3405_v63, %v3401_v61  ;;  %3629 = vmatprep.mubr.bf16.mxu1 %v3459_v13 }
 0x40f   :  { %v3452_v38 = vadd.bf16 %v3442_v15, %v3410_v52  ;;  %3630 = vmatmul.mubr.bf16.vlgmr.msra.gmra.mrb[32].mxu1 %v3458_v1 }
 0x410   :  { %v3453_v43 = vadd.bf16 %v3449_v45, %v3411_v2 }
 0x411   :  { %v3456_v21 = vmul.bf16 1045249613, %v3452_v38 }
 0x412   :  { %v3457_v7 = vmul.bf16 1045249613, %v3453_v43 }
 0x413   :  { %v3460_v41 = vmax.bf16 %v3456_v21, %v3452_v38 }
 0x414   :  { %v3461_v31 = vmax.bf16 %v3457_v7, %v3453_v43 }
 0x416   :  { %3637 = vmatprep.mubr.bf16.mxu1 %v3461_v31 }
 0x417   :  { %3638 = vmatmul.mubr.bf16.gmra.mrb[36].mxu1 %v3460_v41 }
 0x4e2   :  { %v4113_v22 = vpop.f32.mrb[32].mxu1 }
 0x4e3   :  { %v4114_v9 = vpop.f32.mrb[33].mxu1 }
 0x4e4   :  { %v4115_v10 = vadd.f32 %v4114_v9, %v4113_v22  ;;  %v4116_v11 = vpop.f32.mrb[34].mxu1 }
 0x4e5   :  { %v4117_v50 = vpop.f32.mrb[35].mxu1 }
 0x4e6   :  { %v4118_v59 = vadd.f32 %v4117_v50, %v4116_v11  ;;  %v3632_v46 = vadd.f32 %v4115_v10, %v4061_v12 }
 0x4e8   :  { %v3635_v34 = vadd.f32 %v4118_v59, %v4061_v12 }
 0x4ea   :  { %v4089_v40 = vpack.c.bf16 %v3635_v34, %v3632_v46  ;;  %v4119_v6 = vpop.f32.mrb[36].mxu1 }
 0x4eb   :  { %v4120_v0 = vpop.f32.mrb[37].mxu1 }
 0x4ec   :  { %4090 = vst [vmem:[%s5163_s9] sm:$0xff] %v4089_v40   ;;  %v4121_v55 = vadd.f32 %v4120_v0, %v4119_v6  ;;  %v4122_v16 = vpop.f32.mrb[38].mxu1 }
 0x4ed   :  { %v4123_v20 = vpop.f32.mrb[39].mxu1 }
 0x4ee   :  { %v4124_v26 = vadd.f32 %v4123_v20, %v4122_v16  ;;  %v3640_v17 = vadd.f32 %v4121_v55, %v4061_v12 }
 0x4f0   :  { %v3643_v58 = vadd.f32 %v4124_v26, %v4061_v12 }
 0x4f2   :  { %v4094_v23 = vpack.c.bf16 %v3643_v58, %v3640_v17 }
 0x4f4   :  { %4096 = vst [vmem:[%s5163_s9 + $0x8] sm:$0xff] %v4094_v23  }
 0x4f5   :  { %3670 = vsyncpa [#allocation3], 1 }
 0x4f6   :  { %3671 = vsyncpa [#allocation5], 1 }
 0x4f7   :  { %3672 = vsyncpa [#allocation8], 1 }

</bundles_post_ra>
